<compile_context>
chip_gen: v7x
topology: tpu7x:2x2x1
jax: 0.10.0
libtpu: 0.0.40
codegen_flags: <defaults>
</compile_context>

<pallas_src>
import math

import jax
import jax.numpy as jnp
from jax.experimental import pallas as pl
from jax.experimental.pallas import tpu as pltpu

# ---------------- small synthetic config (stand-in for prot_bert_bfd) --------
VOCAB = 30
HIDDEN = 32
N_LAYERS = 2
N_HEADS = 4
HEAD_DIM = HIDDEN // N_HEADS
FFN = 64
MAX_POS = 16
N_CLASSES_A = 21
N_CLASSES_B = 40
HEAD_PAD = 128            # lane-dense padded width for the fused classifier heads
LN_EPS = 1e-12


# ---------------- in-kernel helpers -------------------------------------------


def _ln(x, g, b):
    """LayerNorm over the hidden (lane) axis in f32, eps=1e-12."""
    mu = jnp.mean(x, axis=-1, keepdims=True)
    var = jnp.mean(jnp.square(x - mu), axis=-1, keepdims=True)
    return (x - mu) * jax.lax.rsqrt(var + LN_EPS) * g + b


def _gelu_tanh(y):
    c = math.sqrt(2.0 / math.pi)
    return 0.5 * y * (1.0 + jnp.tanh(c * (y + 0.044715 * y * y * y)))


# ---------------- fused Pallas kernel -----------------------------------------


def _hla_fused_kernel(emb_ref, mask_ref, eg_ref, eb_ref,
                      wqkv_ref, bqkv_ref, wo_ref, bo_ref,
                      g1_ref, bn1_ref, w1_ref, b1_ref,
                      w2_ref, b2_ref, g2_ref, bn2_ref,
                      wp_ref, bp_ref, wh_ref, bh_ref,
                      o_ref):
    B, S, H = emb_ref.shape
    BS = B * S

    # ---- embedding LayerNorm (fused; no separate pallas_call / HBM round-trip)
    h = _ln(emb_ref[...].reshape(BS, H), eg_ref[...], eb_ref[...])        # (BS, H) f32

    # ---- additive attention mask, broadcast ONCE (not once per head)
    mask = jnp.broadcast_to(mask_ref[...], (B, S, S))                     # f32

    for l in range(N_LAYERS):
        # ---- fused QKV projection; Q columns/bias carry 1/sqrt(HEAD_DIM) already
        qkv = (jnp.dot(h.astype(jnp.bfloat16), wqkv_ref[l],
                       preferred_element_type=jnp.float32)
               + bqkv_ref[l]).reshape(B, S, 3 * H)

        # ---- per-head attention; contexts go into a head-concat buffer,
        #      then ONE (BS,H)@(H,H) output projection (full-K MXU pass)
        ctx_parts = []
        for hd in range(N_HEADS):
            lo = hd * HEAD_DIM
            qh = qkv[:, :, lo:lo + HEAD_DIM]
            kh = qkv[:, :, H + lo:H + lo + HEAD_DIM]
            vh = qkv[:, :, 2 * H + lo:2 * H + lo + HEAD_DIM]
            s = jnp.einsum('bqd,bkd->bqk',
                           qh.astype(jnp.bfloat16), kh.astype(jnp.bfloat16),
                           preferred_element_type=jnp.float32) + mask
            m = jnp.max(s, axis=-1, keepdims=True)                        # f32 softmax
            p = jnp.exp(s - m)
            p = p * pl.reciprocal(jnp.sum(p, axis=-1, keepdims=True), approx=True)
            ctx_parts.append(
                jnp.einsum('bqk,bkd->bqd',
                           p.astype(jnp.bfloat16), vh.astype(jnp.bfloat16),
                           preferred_element_type=jnp.float32))
        ctx = jnp.concatenate(ctx_parts, axis=-1).reshape(BS, H)

        attn = (jnp.dot(ctx.astype(jnp.bfloat16), wo_ref[l],
                        preferred_element_type=jnp.float32) + bo_ref[l])

        # ---- add & norm 1 ----
        h1 = _ln(attn + h, g1_ref[l], bn1_ref[l])

        # ---- FFN (GELU, f32 elementwise) ----
        ffn = (jnp.dot(h1.astype(jnp.bfloat16), w1_ref[l],
                       preferred_element_type=jnp.float32) + b1_ref[l])
        ffn = _gelu_tanh(ffn)
        ffn = (jnp.dot(ffn.astype(jnp.bfloat16), w2_ref[l],
                       preferred_element_type=jnp.float32) + b2_ref[l])

        # ---- add & norm 2 ----
        h = _ln(ffn + h1, g2_ref[l], bn2_ref[l])

    # ---- pooler (tanh on [CLS]) + fused classifier heads A|B (lane-dense pad)
    cls = h.reshape(B, S, H)[:, 0, :]                                     # (B, H)
    pooled = jnp.tanh(
        jnp.dot(cls.astype(jnp.bfloat16), wp_ref[...],
                preferred_element_type=jnp.float32) + bp_ref[...])
    logits = (jnp.dot(pooled.astype(jnp.bfloat16), wh_ref[...],
                      preferred_element_type=jnp.float32) + bh_ref[...])
    # exact sigmoid: approx reciprocal could push probabilities outside [0, 1]
    o_ref[...] = 1.0 / (1.0 + jnp.exp(-logits))


# ---------------- deterministic parameter init --------------------------------


def init_params(key):
    keys = iter(jax.random.split(key, 256))

    def w(shape):
        return 0.02 * jax.random.normal(next(keys), shape, jnp.float32)

    params = {
        "word_emb": w((VOCAB, HIDDEN)),
        "pos_emb": w((MAX_POS, HIDDEN)),
        "type_emb": w((2, HIDDEN)),
        "emb_ln_g": jnp.ones((1, HIDDEN), jnp.float32),
        "emb_ln_b": jnp.zeros((1, HIDDEN), jnp.float32),
    }

    q_scale = 1.0 / math.sqrt(HEAD_DIM)
    wqkv, bqkv, wo, bo = [], [], [], []
    ln1_g, ln1_b, w1, b1, w2, b2, ln2_g, ln2_b = ([] for _ in range(8))
    for _ in range(N_LAYERS):
        wq = w((HIDDEN, HIDDEN)) * q_scale      # fold 1/sqrt(head_dim) into Q (host side)
        wk = w((HIDDEN, HIDDEN))
        wv = w((HIDDEN, HIDDEN))
        bq = jnp.zeros((HIDDEN,), jnp.float32) * q_scale
        wqkv.append(jnp.concatenate([wq, wk, wv], axis=1))               # (H, 3H)
        bqkv.append(jnp.concatenate(
            [bq, jnp.zeros((2 * HIDDEN,), jnp.float32)])[None, :])       # (1, 3H)
        wo.append(w((HIDDEN, HIDDEN)))
        bo.append(jnp.zeros((1, HIDDEN), jnp.float32))
        ln1_g.append(jnp.ones((1, HIDDEN), jnp.float32))
        ln1_b.append(jnp.zeros((1, HIDDEN), jnp.float32))
        w1.append(w((HIDDEN, FFN)))
        b1.append(jnp.zeros((1, FFN), jnp.float32))
        w2.append(w((FFN, HIDDEN)))
        b2.append(jnp.zeros((1, HIDDEN), jnp.float32))
        ln2_g.append(jnp.ones((1, HIDDEN), jnp.float32))
        ln2_b.append(jnp.zeros((1, HIDDEN), jnp.float32))

    # stack layer weights on a leading (L, ...) axis for the single fused kernel
    params.update({
        "wqkv": jnp.stack(wqkv), "bqkv": jnp.stack(bqkv),
        "wo": jnp.stack(wo), "bo": jnp.stack(bo),
        "ln1_g": jnp.stack(ln1_g), "ln1_b": jnp.stack(ln1_b),
        "w1": jnp.stack(w1), "b1": jnp.stack(b1),
        "w2": jnp.stack(w2), "b2": jnp.stack(b2),
        "ln2_g": jnp.stack(ln2_g), "ln2_b": jnp.stack(ln2_b),
    })

    params["w_pool"] = w((HIDDEN, HIDDEN))
    params["b_pool"] = jnp.zeros((1, HIDDEN), jnp.float32)

    # fused classifier heads A|B, zero-padded to a lane-dense width (128)
    wA = w((HIDDEN, N_CLASSES_A))
    wB = w((HIDDEN, N_CLASSES_B))
    w_head = jnp.zeros((HIDDEN, HEAD_PAD), jnp.float32)
    w_head = w_head.at[:, :N_CLASSES_A].set(wA)
    w_head = w_head.at[:, N_CLASSES_A:N_CLASSES_A + N_CLASSES_B].set(wB)
    params["w_head"] = w_head
    params["b_head"] = jnp.zeros((1, HEAD_PAD), jnp.float32)
    return params


# ---------------- HLAPredictor forward ----------------------------------------


def hla_predictor_forward(params, input_ids, attention_mask):
    B, S = input_ids.shape

    # --- BERT embeddings (gathers are glue JAX; everything else runs in Pallas) ---
    emb = (params["word_emb"][input_ids]
           + params["pos_emb"][jnp.arange(S)][None, :, :]
           + params["type_emb"][0][None, None, :])                       # (B, S, H) f32

    # HF-BERT style additive attention mask, (B, 1, S)
    add_mask = ((1.0 - attention_mask.astype(jnp.float32)) * -10000.0)[:, None, :]

    bf = lambda a: a.astype(jnp.bfloat16)    # matmul weights to bf16 at the boundary

    out = pl.pallas_call(
        _hla_fused_kernel,
        out_shape=jax.ShapeDtypeStruct((B, HEAD_PAD), jnp.float32),
    )(emb, add_mask, params["emb_ln_g"], params["emb_ln_b"],
      bf(params["wqkv"]), params["bqkv"], bf(params["wo"]), params["bo"],
      params["ln1_g"], params["ln1_b"], bf(params["w1"]), params["b1"],
      bf(params["w2"]), params["b2"], params["ln2_g"], params["ln2_b"],
      bf(params["w_pool"]), params["b_pool"],
      bf(params["w_head"]), params["b_head"])

    out_a = out[:, :N_CLASSES_A]
    out_b = out[:, N_CLASSES_A:N_CLASSES_A + N_CLASSES_B]
    return out_a, out_b


# TODO(synk): pretrained prot_bert_bfd weights are not loadable here; synthetic
#             deterministic weights are used instead (same forward structure).
# TODO(synk): at real prot_bert_bfd scale (HIDDEN=1024, FFN=4096, 30 layers) the
#             whole-model-weights-in-VMEM approach does not fit (esp. v7x 64 MiB):
#             tile the linears over a (tm, tn, tk) grid with a VMEM f32 accumulator
#             ("arbitrary" on K), keep bf16 weights, grid over (B, S_q tiles) marked
#             "parallel" for the two v7x TensorCores, and prefetch layer i+1 weights
#             (pl.ANY refs + pltpu.make_async_copy double-buffer) behind layer i.


if __name__ == "__main__":
    key = jax.random.PRNGKey(0)
    k_param, k_ids = jax.random.split(key)

    params = init_params(k_param)

    B, S = 2, 8
    input_ids = jax.random.randint(k_ids, (B, S), 0, VOCAB, dtype=jnp.int32)
    attention_mask = jnp.array(
        [[1, 1, 1, 1, 1, 1, 1, 1],
         [1, 1, 1, 1, 1, 1, 0, 0]], dtype=jnp.int32)

    fwd = jax.jit(hla_predictor_forward)
    out_a, out_b = fwd(params, input_ids, attention_mask)
    jax.block_until_ready((out_a, out_b))

    assert out_a.shape == (B, N_CLASSES_A) and out_b.shape == (B, N_CLASSES_B)
    assert bool(jnp.all(jnp.isfinite(out_a))) and bool(jnp.all(jnp.isfinite(out_b)))
    assert bool(jnp.all((out_a >= 0) & (out_a <= 1)))
    assert bool(jnp.all((out_b >= 0) & (out_b <= 1)))
    print("KERNEL_OK")
</pallas_src>

<mosaic_0001>
module attributes {stable_mosaic.version = 11 : i64} {
  func.func @_hla_fused_kernel(%arg0: memref<2x8x32xf32, #tpu.memory_space<vmem>>, %arg1: memref<2x1x8xf32, #tpu.memory_space<vmem>>, %arg2: memref<1x32xf32, #tpu.memory_space<vmem>>, %arg3: memref<1x32xf32, #tpu.memory_space<vmem>>, %arg4: memref<2x32x96xbf16, #tpu.memory_space<vmem>>, %arg5: memref<2x1x96xf32, #tpu.memory_space<vmem>>, %arg6: memref<2x32x32xbf16, #tpu.memory_space<vmem>>, %arg7: memref<2x1x32xf32, #tpu.memory_space<vmem>>, %arg8: memref<2x1x32xf32, #tpu.memory_space<vmem>>, %arg9: memref<2x1x32xf32, #tpu.memory_space<vmem>>, %arg10: memref<2x32x64xbf16, #tpu.memory_space<vmem>>, %arg11: memref<2x1x64xf32, #tpu.memory_space<vmem>>, %arg12: memref<2x64x32xbf16, #tpu.memory_space<vmem>>, %arg13: memref<2x1x32xf32, #tpu.memory_space<vmem>>, %arg14: memref<2x1x32xf32, #tpu.memory_space<vmem>>, %arg15: memref<2x1x32xf32, #tpu.memory_space<vmem>>, %arg16: memref<32x32xbf16, #tpu.memory_space<vmem>>, %arg17: memref<1x32xf32, #tpu.memory_space<vmem>>, %arg18: memref<32x128xbf16, #tpu.memory_space<vmem>>, %arg19: memref<1x128xf32, #tpu.memory_space<vmem>>, %arg20: memref<2x128xf32, #tpu.memory_space<vmem>>) attributes {dimension_semantics = [], scalar_prefetch = 0 : i64, scratch_operands = 0 : i64, tpu.core_type = #tpu.core_type<tc>} {
    %c0 = arith.constant 0 : index
    %c0_0 = arith.constant 0 : index
    %c0_1 = arith.constant 0 : index
    %0 = vector.load %arg0[%c0, %c0_0, %c0_1] : memref<2x8x32xf32, #tpu.memory_space<vmem>>, vector<2x8x32xf32>
    %1 = vector.shape_cast %0 : vector<2x8x32xf32> to vector<16x32xf32>
    %c0_2 = arith.constant 0 : index
    %c0_3 = arith.constant 0 : index
    %2 = vector.load %arg2[%c0_2, %c0_3] : memref<1x32xf32, #tpu.memory_space<vmem>>, vector<1x32xf32>
    %c0_4 = arith.constant 0 : index
    %c0_5 = arith.constant 0 : index
    %3 = vector.load %arg3[%c0_4, %c0_5] : memref<1x32xf32, #tpu.memory_space<vmem>>, vector<1x32xf32>
    %cst = arith.constant dense<0.000000e+00> : vector<16xf32>
    %4 = vector.multi_reduction <add>, %1, %cst [1] : vector<16x32xf32> to vector<16xf32>
    %5 = vector.shape_cast %4 : vector<16xf32> to vector<16x1xf32>
    %cst_6 = arith.constant 3.200000e+01 : f32
    %6 = vector.broadcast %cst_6 : f32 to vector<16x1xf32>
    %7 = arith.divf %5, %6 : vector<16x1xf32>
    %8 = vector.broadcast %7 : vector<16x1xf32> to vector<16x32xf32>
    %9 = arith.subf %1, %8 : vector<16x32xf32>
    %10 = arith.mulf %9, %9 : vector<16x32xf32>
    %cst_7 = arith.constant dense<0.000000e+00> : vector<16xf32>
    %11 = vector.multi_reduction <add>, %10, %cst_7 [1] : vector<16x32xf32> to vector<16xf32>
    %12 = vector.shape_cast %11 : vector<16xf32> to vector<16x1xf32>
    %cst_8 = arith.constant 3.200000e+01 : f32
    %13 = vector.broadcast %cst_8 : f32 to vector<16x1xf32>
    %14 = arith.divf %12, %13 : vector<16x1xf32>
    %15 = vector.broadcast %7 : vector<16x1xf32> to vector<16x32xf32>
    %16 = arith.subf %1, %15 : vector<16x32xf32>
    %cst_9 = arith.constant 9.99999996E-13 : f32
    %17 = vector.broadcast %cst_9 : f32 to vector<16x1xf32>
    %18 = arith.addf %14, %17 : vector<16x1xf32>
    %19 = math.rsqrt %18 : vector<16x1xf32>
    %20 = vector.broadcast %19 : vector<16x1xf32> to vector<16x32xf32>
    %21 = arith.mulf %16, %20 : vector<16x32xf32>
    %22 = vector.broadcast %2 : vector<1x32xf32> to vector<16x32xf32>
    %23 = arith.mulf %21, %22 : vector<16x32xf32>
    %24 = vector.broadcast %3 : vector<1x32xf32> to vector<16x32xf32>
    %25 = arith.addf %23, %24 : vector<16x32xf32>
    %c0_10 = arith.constant 0 : index
    %c0_11 = arith.constant 0 : index
    %c0_12 = arith.constant 0 : index
    %26 = vector.load %arg1[%c0_10, %c0_11, %c0_12] : memref<2x1x8xf32, #tpu.memory_space<vmem>>, vector<2x1x8xf32>
    %27 = vector.shape_cast %26 : vector<2x1x8xf32> to vector<2x1x8xf32>
    %28 = vector.broadcast %27 : vector<2x1x8xf32> to vector<2x8x8xf32>
    %29 = arith.truncf %25 : vector<16x32xf32> to vector<16x32xbf16>
    %c0_13 = arith.constant 0 : index
    %c0_14 = arith.constant 0 : index
    %c0_15 = arith.constant 0 : index
    %30 = vector.load %arg4[%c0_13, %c0_14, %c0_15] : memref<2x32x96xbf16, #tpu.memory_space<vmem>>, vector<1x32x96xbf16>
    %31 = vector.shape_cast %30 : vector<1x32x96xbf16> to vector<32x96xbf16>
    %cst_16 = arith.constant dense<0.000000e+00> : vector<16x96xf32>
    %32 = tpu.matmul %29, %31, %cst_16 {dimension_numbers = #tpu.dot_dimension_numbers<[1], [0], [0], [1], [0, 0, 1, 1], [], []>} : vector<16x32xbf16>, vector<32x96xbf16>, vector<16x96xf32> -> vector<16x96xf32>
    %c0_17 = arith.constant 0 : index
    %c0_18 = arith.constant 0 : index
    %c0_19 = arith.constant 0 : index
    %33 = vector.load %arg5[%c0_17, %c0_18, %c0_19] : memref<2x1x96xf32, #tpu.memory_space<vmem>>, vector<1x1x96xf32>
    %34 = vector.shape_cast %33 : vector<1x1x96xf32> to vector<1x96xf32>
    %35 = vector.broadcast %34 : vector<1x96xf32> to vector<16x96xf32>
    %36 = arith.addf %32, %35 : vector<16x96xf32>
    %37 = vector.shape_cast %36 : vector<16x96xf32> to vector<2x8x96xf32>
    %38 = vector.extract_strided_slice %37 {offsets = [0, 0, 0], sizes = [2, 8, 8], strides = [1, 1, 1]} : vector<2x8x96xf32> to vector<2x8x8xf32>
    %39 = vector.extract_strided_slice %37 {offsets = [0, 0, 32], sizes = [2, 8, 8], strides = [1, 1, 1]} : vector<2x8x96xf32> to vector<2x8x8xf32>
    %40 = vector.extract_strided_slice %37 {offsets = [0, 0, 64], sizes = [2, 8, 8], strides = [1, 1, 1]} : vector<2x8x96xf32> to vector<2x8x8xf32>
    %41 = arith.truncf %38 : vector<2x8x8xf32> to vector<2x8x8xbf16>
    %42 = arith.truncf %39 : vector<2x8x8xf32> to vector<2x8x8xbf16>
    "tpu.trace_start"() <{level = 10 : i32, message = "bqd,bkd->bqk"}> : () -> ()
    %cst_20 = arith.constant dense<0.000000e+00> : vector<2x8x8xf32>
    %43 = tpu.matmul %41, %42, %cst_20 {dimension_numbers = #tpu.dot_dimension_numbers<[2], [2], [1], [1], [0, 0, 0, 1, 1, 1], [0], [0]>} : vector<2x8x8xbf16>, vector<2x8x8xbf16>, vector<2x8x8xf32> -> vector<2x8x8xf32>
    "tpu.trace_stop"() : () -> ()
    %44 = arith.addf %43, %28 : vector<2x8x8xf32>
    %cst_21 = arith.constant dense<0xFF800000> : vector<2x8xf32>
    %45 = vector.multi_reduction <maximumf>, %44, %cst_21 [2] : vector<2x8x8xf32> to vector<2x8xf32>
    %46 = vector.shape_cast %45 : vector<2x8xf32> to vector<2x8x1xf32>
    %47 = vector.broadcast %46 : vector<2x8x1xf32> to vector<2x8x8xf32>
    %48 = arith.subf %44, %47 : vector<2x8x8xf32>
    %49 = math.exp %48 : vector<2x8x8xf32>
    %cst_22 = arith.constant dense<0.000000e+00> : vector<2x8xf32>
    %50 = vector.multi_reduction <add>, %49, %cst_22 [2] : vector<2x8x8xf32> to vector<2x8xf32>
    %51 = vector.shape_cast %50 : vector<2x8xf32> to vector<2x8x1xf32>
    %52 = tpu.reciprocal %51 {approx = true} : vector<2x8x1xf32> -> vector<2x8x1xf32>
    %53 = vector.broadcast %52 : vector<2x8x1xf32> to vector<2x8x8xf32>
    %54 = arith.mulf %49, %53 : vector<2x8x8xf32>
    %55 = arith.truncf %54 : vector<2x8x8xf32> to vector<2x8x8xbf16>
    %56 = arith.truncf %40 : vector<2x8x8xf32> to vector<2x8x8xbf16>
    "tpu.trace_start"() <{level = 10 : i32, message = "bqk,bkd->bqd"}> : () -> ()
    %cst_23 = arith.constant dense<0.000000e+00> : vector<2x8x8xf32>
    %57 = tpu.matmul %55, %56, %cst_23 {dimension_numbers = #tpu.dot_dimension_numbers<[2], [1], [1], [2], [0, 0, 0, 1, 1, 2], [0], [0]>} : vector<2x8x8xbf16>, vector<2x8x8xbf16>, vector<2x8x8xf32> -> vector<2x8x8xf32>
    "tpu.trace_stop"() : () -> ()
    %58 = vector.extract_strided_slice %37 {offsets = [0, 0, 8], sizes = [2, 8, 8], strides = [1, 1, 1]} : vector<2x8x96xf32> to vector<2x8x8xf32>
    %59 = vector.extract_strided_slice %37 {offsets = [0, 0, 40], sizes = [2, 8, 8], strides = [1, 1, 1]} : vector<2x8x96xf32> to vector<2x8x8xf32>
    %60 = vector.extract_strided_slice %37 {offsets = [0, 0, 72], sizes = [2, 8, 8], strides = [1, 1, 1]} : vector<2x8x96xf32> to vector<2x8x8xf32>
    %61 = arith.truncf %58 : vector<2x8x8xf32> to vector<2x8x8xbf16>
    %62 = arith.truncf %59 : vector<2x8x8xf32> to vector<2x8x8xbf16>
    "tpu.trace_start"() <{level = 10 : i32, message = "bqd,bkd->bqk"}> : () -> ()
    %cst_24 = arith.constant dense<0.000000e+00> : vector<2x8x8xf32>
    %63 = tpu.matmul %61, %62, %cst_24 {dimension_numbers = #tpu.dot_dimension_numbers<[2], [2], [1], [1], [0, 0, 0, 1, 1, 1], [0], [0]>} : vector<2x8x8xbf16>, vector<2x8x8xbf16>, vector<2x8x8xf32> -> vector<2x8x8xf32>
    "tpu.trace_stop"() : () -> ()
    %64 = arith.addf %63, %28 : vector<2x8x8xf32>
    %cst_25 = arith.constant dense<0xFF800000> : vector<2x8xf32>
    %65 = vector.multi_reduction <maximumf>, %64, %cst_25 [2] : vector<2x8x8xf32> to vector<2x8xf32>
    %66 = vector.shape_cast %65 : vector<2x8xf32> to vector<2x8x1xf32>
    %67 = vector.broadcast %66 : vector<2x8x1xf32> to vector<2x8x8xf32>
    %68 = arith.subf %64, %67 : vector<2x8x8xf32>
    %69 = math.exp %68 : vector<2x8x8xf32>
    %cst_26 = arith.constant dense<0.000000e+00> : vector<2x8xf32>
    %70 = vector.multi_reduction <add>, %69, %cst_26 [2] : vector<2x8x8xf32> to vector<2x8xf32>
    %71 = vector.shape_cast %70 : vector<2x8xf32> to vector<2x8x1xf32>
    %72 = tpu.reciprocal %71 {approx = true} : vector<2x8x1xf32> -> vector<2x8x1xf32>
    %73 = vector.broadcast %72 : vector<2x8x1xf32> to vector<2x8x8xf32>
    %74 = arith.mulf %69, %73 : vector<2x8x8xf32>
    %75 = arith.truncf %74 : vector<2x8x8xf32> to vector<2x8x8xbf16>
    %76 = arith.truncf %60 : vector<2x8x8xf32> to vector<2x8x8xbf16>
    "tpu.trace_start"() <{level = 10 : i32, message = "bqk,bkd->bqd"}> : () -> ()
    %cst_27 = arith.constant dense<0.000000e+00> : vector<2x8x8xf32>
    %77 = tpu.matmul %75, %76, %cst_27 {dimension_numbers = #tpu.dot_dimension_numbers<[2], [1], [1], [2], [0, 0, 0, 1, 1, 2], [0], [0]>} : vector<2x8x8xbf16>, vector<2x8x8xbf16>, vector<2x8x8xf32> -> vector<2x8x8xf32>
    "tpu.trace_stop"() : () -> ()
    %78 = vector.extract_strided_slice %37 {offsets = [0, 0, 16], sizes = [2, 8, 8], strides = [1, 1, 1]} : vector<2x8x96xf32> to vector<2x8x8xf32>
    %79 = vector.extract_strided_slice %37 {offsets = [0, 0, 48], sizes = [2, 8, 8], strides = [1, 1, 1]} : vector<2x8x96xf32> to vector<2x8x8xf32>
    %80 = vector.extract_strided_slice %37 {offsets = [0, 0, 80], sizes = [2, 8, 8], strides = [1, 1, 1]} : vector<2x8x96xf32> to vector<2x8x8xf32>
    %81 = arith.truncf %78 : vector<2x8x8xf32> to vector<2x8x8xbf16>
    %82 = arith.truncf %79 : vector<2x8x8xf32> to vector<2x8x8xbf16>
    "tpu.trace_start"() <{level = 10 : i32, message = "bqd,bkd->bqk"}> : () -> ()
    %cst_28 = arith.constant dense<0.000000e+00> : vector<2x8x8xf32>
    %83 = tpu.matmul %81, %82, %cst_28 {dimension_numbers = #tpu.dot_dimension_numbers<[2], [2], [1], [1], [0, 0, 0, 1, 1, 1], [0], [0]>} : vector<2x8x8xbf16>, vector<2x8x8xbf16>, vector<2x8x8xf32> -> vector<2x8x8xf32>
    "tpu.trace_stop"() : () -> ()
    %84 = arith.addf %83, %28 : vector<2x8x8xf32>
    %cst_29 = arith.constant dense<0xFF800000> : vector<2x8xf32>
    %85 = vector.multi_reduction <maximumf>, %84, %cst_29 [2] : vector<2x8x8xf32> to vector<2x8xf32>
    %86 = vector.shape_cast %85 : vector<2x8xf32> to vector<2x8x1xf32>
    %87 = vector.broadcast %86 : vector<2x8x1xf32> to vector<2x8x8xf32>
    %88 = arith.subf %84, %87 : vector<2x8x8xf32>
    %89 = math.exp %88 : vector<2x8x8xf32>
    %cst_30 = arith.constant dense<0.000000e+00> : vector<2x8xf32>
    %90 = vector.multi_reduction <add>, %89, %cst_30 [2] : vector<2x8x8xf32> to vector<2x8xf32>
    %91 = vector.shape_cast %90 : vector<2x8xf32> to vector<2x8x1xf32>
    %92 = tpu.reciprocal %91 {approx = true} : vector<2x8x1xf32> -> vector<2x8x1xf32>
    %93 = vector.broadcast %92 : vector<2x8x1xf32> to vector<2x8x8xf32>
    %94 = arith.mulf %89, %93 : vector<2x8x8xf32>
    %95 = arith.truncf %94 : vector<2x8x8xf32> to vector<2x8x8xbf16>
    %96 = arith.truncf %80 : vector<2x8x8xf32> to vector<2x8x8xbf16>
    "tpu.trace_start"() <{level = 10 : i32, message = "bqk,bkd->bqd"}> : () -> ()
    %cst_31 = arith.constant dense<0.000000e+00> : vector<2x8x8xf32>
    %97 = tpu.matmul %95, %96, %cst_31 {dimension_numbers = #tpu.dot_dimension_numbers<[2], [1], [1], [2], [0, 0, 0, 1, 1, 2], [0], [0]>} : vector<2x8x8xbf16>, vector<2x8x8xbf16>, vector<2x8x8xf32> -> vector<2x8x8xf32>
    "tpu.trace_stop"() : () -> ()
    %98 = vector.extract_strided_slice %37 {offsets = [0, 0, 24], sizes = [2, 8, 8], strides = [1, 1, 1]} : vector<2x8x96xf32> to vector<2x8x8xf32>
    %99 = vector.extract_strided_slice %37 {offsets = [0, 0, 56], sizes = [2, 8, 8], strides = [1, 1, 1]} : vector<2x8x96xf32> to vector<2x8x8xf32>
    %100 = vector.extract_strided_slice %37 {offsets = [0, 0, 88], sizes = [2, 8, 8], strides = [1, 1, 1]} : vector<2x8x96xf32> to vector<2x8x8xf32>
    %101 = arith.truncf %98 : vector<2x8x8xf32> to vector<2x8x8xbf16>
    %102 = arith.truncf %99 : vector<2x8x8xf32> to vector<2x8x8xbf16>
    "tpu.trace_start"() <{level = 10 : i32, message = "bqd,bkd->bqk"}> : () -> ()
    %cst_32 = arith.constant dense<0.000000e+00> : vector<2x8x8xf32>
    %103 = tpu.matmul %101, %102, %cst_32 {dimension_numbers = #tpu.dot_dimension_numbers<[2], [2], [1], [1], [0, 0, 0, 1, 1, 1], [0], [0]>} : vector<2x8x8xbf16>, vector<2x8x8xbf16>, vector<2x8x8xf32> -> vector<2x8x8xf32>
    "tpu.trace_stop"() : () -> ()
    %104 = arith.addf %103, %28 : vector<2x8x8xf32>
    %cst_33 = arith.constant dense<0xFF800000> : vector<2x8xf32>
    %105 = vector.multi_reduction <maximumf>, %104, %cst_33 [2] : vector<2x8x8xf32> to vector<2x8xf32>
    %106 = vector.shape_cast %105 : vector<2x8xf32> to vector<2x8x1xf32>
    %107 = vector.broadcast %106 : vector<2x8x1xf32> to vector<2x8x8xf32>
    %108 = arith.subf %104, %107 : vector<2x8x8xf32>
    %109 = math.exp %108 : vector<2x8x8xf32>
    %cst_34 = arith.constant dense<0.000000e+00> : vector<2x8xf32>
    %110 = vector.multi_reduction <add>, %109, %cst_34 [2] : vector<2x8x8xf32> to vector<2x8xf32>
    %111 = vector.shape_cast %110 : vector<2x8xf32> to vector<2x8x1xf32>
    %112 = tpu.reciprocal %111 {approx = true} : vector<2x8x1xf32> -> vector<2x8x1xf32>
    %113 = vector.broadcast %112 : vector<2x8x1xf32> to vector<2x8x8xf32>
    %114 = arith.mulf %109, %113 : vector<2x8x8xf32>
    %115 = arith.truncf %114 : vector<2x8x8xf32> to vector<2x8x8xbf16>
    %116 = arith.truncf %100 : vector<2x8x8xf32> to vector<2x8x8xbf16>
    "tpu.trace_start"() <{level = 10 : i32, message = "bqk,bkd->bqd"}> : () -> ()
    %cst_35 = arith.constant dense<0.000000e+00> : vector<2x8x8xf32>
    %117 = tpu.matmul %115, %116, %cst_35 {dimension_numbers = #tpu.dot_dimension_numbers<[2], [1], [1], [2], [0, 0, 0, 1, 1, 2], [0], [0]>} : vector<2x8x8xbf16>, vector<2x8x8xbf16>, vector<2x8x8xf32> -> vector<2x8x8xf32>
    "tpu.trace_stop"() : () -> ()
    %118 = tpu.concatenate %57, %77, %97, %117 in 2 : vector<2x8x8xf32>, vector<2x8x8xf32>, vector<2x8x8xf32>, vector<2x8x8xf32> -> vector<2x8x32xf32>
    %119 = vector.shape_cast %118 : vector<2x8x32xf32> to vector<16x32xf32>
    %120 = arith.truncf %119 : vector<16x32xf32> to vector<16x32xbf16>
    %c0_36 = arith.constant 0 : index
    %c0_37 = arith.constant 0 : index
    %c0_38 = arith.constant 0 : index
    %121 = vector.load %arg6[%c0_36, %c0_37, %c0_38] : memref<2x32x32xbf16, #tpu.memory_space<vmem>>, vector<1x32x32xbf16>
    %122 = vector.shape_cast %121 : vector<1x32x32xbf16> to vector<32x32xbf16>
    %cst_39 = arith.constant dense<0.000000e+00> : vector<16x32xf32>
    %123 = tpu.matmul %120, %122, %cst_39 {dimension_numbers = #tpu.dot_dimension_numbers<[1], [0], [0], [1], [0, 0, 1, 1], [], []>} : vector<16x32xbf16>, vector<32x32xbf16>, vector<16x32xf32> -> vector<16x32xf32>
    %c0_40 = arith.constant 0 : index
    %c0_41 = arith.constant 0 : index
    %c0_42 = arith.constant 0 : index
    %124 = vector.load %arg7[%c0_40, %c0_41, %c0_42] : memref<2x1x32xf32, #tpu.memory_space<vmem>>, vector<1x1x32xf32>
    %125 = vector.shape_cast %124 : vector<1x1x32xf32> to vector<1x32xf32>
    %126 = vector.broadcast %125 : vector<1x32xf32> to vector<16x32xf32>
    %127 = arith.addf %123, %126 : vector<16x32xf32>
    %128 = arith.addf %127, %25 : vector<16x32xf32>
    %c0_43 = arith.constant 0 : index
    %c0_44 = arith.constant 0 : index
    %c0_45 = arith.constant 0 : index
    %129 = vector.load %arg8[%c0_43, %c0_44, %c0_45] : memref<2x1x32xf32, #tpu.memory_space<vmem>>, vector<1x1x32xf32>
    %130 = vector.shape_cast %129 : vector<1x1x32xf32> to vector<1x32xf32>
    %c0_46 = arith.constant 0 : index
    %c0_47 = arith.constant 0 : index
    %c0_48 = arith.constant 0 : index
    %131 = vector.load %arg9[%c0_46, %c0_47, %c0_48] : memref<2x1x32xf32, #tpu.memory_space<vmem>>, vector<1x1x32xf32>
    %132 = vector.shape_cast %131 : vector<1x1x32xf32> to vector<1x32xf32>
    %cst_49 = arith.constant dense<0.000000e+00> : vector<16xf32>
    %133 = vector.multi_reduction <add>, %128, %cst_49 [1] : vector<16x32xf32> to vector<16xf32>
    %134 = vector.shape_cast %133 : vector<16xf32> to vector<16x1xf32>
    %cst_50 = arith.constant 3.200000e+01 : f32
    %135 = vector.broadcast %cst_50 : f32 to vector<16x1xf32>
    %136 = arith.divf %134, %135 : vector<16x1xf32>
    %137 = vector.broadcast %136 : vector<16x1xf32> to vector<16x32xf32>
    %138 = arith.subf %128, %137 : vector<16x32xf32>
    %139 = arith.mulf %138, %138 : vector<16x32xf32>
    %cst_51 = arith.constant dense<0.000000e+00> : vector<16xf32>
    %140 = vector.multi_reduction <add>, %139, %cst_51 [1] : vector<16x32xf32> to vector<16xf32>
    %141 = vector.shape_cast %140 : vector<16xf32> to vector<16x1xf32>
    %cst_52 = arith.constant 3.200000e+01 : f32
    %142 = vector.broadcast %cst_52 : f32 to vector<16x1xf32>
    %143 = arith.divf %141, %142 : vector<16x1xf32>
    %144 = vector.broadcast %136 : vector<16x1xf32> to vector<16x32xf32>
    %145 = arith.subf %128, %144 : vector<16x32xf32>
    %cst_53 = arith.constant 9.99999996E-13 : f32
    %146 = vector.broadcast %cst_53 : f32 to vector<16x1xf32>
    %147 = arith.addf %143, %146 : vector<16x1xf32>
    %148 = math.rsqrt %147 : vector<16x1xf32>
    %149 = vector.broadcast %148 : vector<16x1xf32> to vector<16x32xf32>
    %150 = arith.mulf %145, %149 : vector<16x32xf32>
    %151 = vector.broadcast %130 : vector<1x32xf32> to vector<16x32xf32>
    %152 = arith.mulf %150, %151 : vector<16x32xf32>
    %153 = vector.broadcast %132 : vector<1x32xf32> to vector<16x32xf32>
    %154 = arith.addf %152, %153 : vector<16x32xf32>
    %155 = arith.truncf %154 : vector<16x32xf32> to vector<16x32xbf16>
    %c0_54 = arith.constant 0 : index
    %c0_55 = arith.constant 0 : index
    %c0_56 = arith.constant 0 : index
    %156 = vector.load %arg10[%c0_54, %c0_55, %c0_56] : memref<2x32x64xbf16, #tpu.memory_space<vmem>>, vector<1x32x64xbf16>
    %157 = vector.shape_cast %156 : vector<1x32x64xbf16> to vector<32x64xbf16>
    %cst_57 = arith.constant dense<0.000000e+00> : vector<16x64xf32>
    %158 = tpu.matmul %155, %157, %cst_57 {dimension_numbers = #tpu.dot_dimension_numbers<[1], [0], [0], [1], [0, 0, 1, 1], [], []>} : vector<16x32xbf16>, vector<32x64xbf16>, vector<16x64xf32> -> vector<16x64xf32>
    %c0_58 = arith.constant 0 : index
    %c0_59 = arith.constant 0 : index
    %c0_60 = arith.constant 0 : index
    %159 = vector.load %arg11[%c0_58, %c0_59, %c0_60] : memref<2x1x64xf32, #tpu.memory_space<vmem>>, vector<1x1x64xf32>
    %160 = vector.shape_cast %159 : vector<1x1x64xf32> to vector<1x64xf32>
    %161 = vector.broadcast %160 : vector<1x64xf32> to vector<16x64xf32>
    %162 = arith.addf %158, %161 : vector<16x64xf32>
    %cst_61 = arith.constant 5.000000e-01 : f32
    %163 = vector.broadcast %cst_61 : f32 to vector<16x64xf32>
    %164 = arith.mulf %163, %162 : vector<16x64xf32>
    %cst_62 = arith.constant 4.471500e-02 : f32
    %165 = vector.broadcast %cst_62 : f32 to vector<16x64xf32>
    %166 = arith.mulf %165, %162 : vector<16x64xf32>
    %167 = arith.mulf %166, %162 : vector<16x64xf32>
    %168 = arith.mulf %167, %162 : vector<16x64xf32>
    %169 = arith.addf %162, %168 : vector<16x64xf32>
    %cst_63 = arith.constant 0.797884583 : f32
    %170 = vector.broadcast %cst_63 : f32 to vector<16x64xf32>
    %171 = arith.mulf %170, %169 : vector<16x64xf32>
    %172 = math.tanh %171 : vector<16x64xf32>
    %cst_64 = arith.constant 1.000000e+00 : f32
    %173 = vector.broadcast %cst_64 : f32 to vector<16x64xf32>
    %174 = arith.addf %173, %172 : vector<16x64xf32>
    %175 = arith.mulf %164, %174 : vector<16x64xf32>
    %176 = arith.truncf %175 : vector<16x64xf32> to vector<16x64xbf16>
    %c0_65 = arith.constant 0 : index
    %c0_66 = arith.constant 0 : index
    %c0_67 = arith.constant 0 : index
    %177 = vector.load %arg12[%c0_65, %c0_66, %c0_67] : memref<2x64x32xbf16, #tpu.memory_space<vmem>>, vector<1x64x32xbf16>
    %178 = vector.shape_cast %177 : vector<1x64x32xbf16> to vector<64x32xbf16>
    %cst_68 = arith.constant dense<0.000000e+00> : vector<16x32xf32>
    %179 = tpu.matmul %176, %178, %cst_68 {dimension_numbers = #tpu.dot_dimension_numbers<[1], [0], [0], [1], [0, 0, 1, 1], [], []>} : vector<16x64xbf16>, vector<64x32xbf16>, vector<16x32xf32> -> vector<16x32xf32>
    %c0_69 = arith.constant 0 : index
    %c0_70 = arith.constant 0 : index
    %c0_71 = arith.constant 0 : index
    %180 = vector.load %arg13[%c0_69, %c0_70, %c0_71] : memref<2x1x32xf32, #tpu.memory_space<vmem>>, vector<1x1x32xf32>
    %181 = vector.shape_cast %180 : vector<1x1x32xf32> to vector<1x32xf32>
    %182 = vector.broadcast %181 : vector<1x32xf32> to vector<16x32xf32>
    %183 = arith.addf %179, %182 : vector<16x32xf32>
    %184 = arith.addf %183, %154 : vector<16x32xf32>
    %c0_72 = arith.constant 0 : index
    %c0_73 = arith.constant 0 : index
    %c0_74 = arith.constant 0 : index
    %185 = vector.load %arg14[%c0_72, %c0_73, %c0_74] : memref<2x1x32xf32, #tpu.memory_space<vmem>>, vector<1x1x32xf32>
    %186 = vector.shape_cast %185 : vector<1x1x32xf32> to vector<1x32xf32>
    %c0_75 = arith.constant 0 : index
    %c0_76 = arith.constant 0 : index
    %c0_77 = arith.constant 0 : index
    %187 = vector.load %arg15[%c0_75, %c0_76, %c0_77] : memref<2x1x32xf32, #tpu.memory_space<vmem>>, vector<1x1x32xf32>
    %188 = vector.shape_cast %187 : vector<1x1x32xf32> to vector<1x32xf32>
    %cst_78 = arith.constant dense<0.000000e+00> : vector<16xf32>
    %189 = vector.multi_reduction <add>, %184, %cst_78 [1] : vector<16x32xf32> to vector<16xf32>
    %190 = vector.shape_cast %189 : vector<16xf32> to vector<16x1xf32>
    %cst_79 = arith.constant 3.200000e+01 : f32
    %191 = vector.broadcast %cst_79 : f32 to vector<16x1xf32>
    %192 = arith.divf %190, %191 : vector<16x1xf32>
    %193 = vector.broadcast %192 : vector<16x1xf32> to vector<16x32xf32>
    %194 = arith.subf %184, %193 : vector<16x32xf32>
    %195 = arith.mulf %194, %194 : vector<16x32xf32>
    %cst_80 = arith.constant dense<0.000000e+00> : vector<16xf32>
    %196 = vector.multi_reduction <add>, %195, %cst_80 [1] : vector<16x32xf32> to vector<16xf32>
    %197 = vector.shape_cast %196 : vector<16xf32> to vector<16x1xf32>
    %cst_81 = arith.constant 3.200000e+01 : f32
    %198 = vector.broadcast %cst_81 : f32 to vector<16x1xf32>
    %199 = arith.divf %197, %198 : vector<16x1xf32>
    %200 = vector.broadcast %192 : vector<16x1xf32> to vector<16x32xf32>
    %201 = arith.subf %184, %200 : vector<16x32xf32>
    %cst_82 = arith.constant 9.99999996E-13 : f32
    %202 = vector.broadcast %cst_82 : f32 to vector<16x1xf32>
    %203 = arith.addf %199, %202 : vector<16x1xf32>
    %204 = math.rsqrt %203 : vector<16x1xf32>
    %205 = vector.broadcast %204 : vector<16x1xf32> to vector<16x32xf32>
    %206 = arith.mulf %201, %205 : vector<16x32xf32>
    %207 = vector.broadcast %186 : vector<1x32xf32> to vector<16x32xf32>
    %208 = arith.mulf %206, %207 : vector<16x32xf32>
    %209 = vector.broadcast %188 : vector<1x32xf32> to vector<16x32xf32>
    %210 = arith.addf %208, %209 : vector<16x32xf32>
    %211 = arith.truncf %210 : vector<16x32xf32> to vector<16x32xbf16>
    %c1 = arith.constant 1 : index
    %c0_83 = arith.constant 0 : index
    %c0_84 = arith.constant 0 : index
    %212 = vector.load %arg4[%c1, %c0_83, %c0_84] : memref<2x32x96xbf16, #tpu.memory_space<vmem>>, vector<1x32x96xbf16>
    %213 = vector.shape_cast %212 : vector<1x32x96xbf16> to vector<32x96xbf16>
    %cst_85 = arith.constant dense<0.000000e+00> : vector<16x96xf32>
    %214 = tpu.matmul %211, %213, %cst_85 {dimension_numbers = #tpu.dot_dimension_numbers<[1], [0], [0], [1], [0, 0, 1, 1], [], []>} : vector<16x32xbf16>, vector<32x96xbf16>, vector<16x96xf32> -> vector<16x96xf32>
    %c1_86 = arith.constant 1 : index
    %c0_87 = arith.constant 0 : index
    %c0_88 = arith.constant 0 : index
    %215 = vector.load %arg5[%c1_86, %c0_87, %c0_88] : memref<2x1x96xf32, #tpu.memory_space<vmem>>, vector<1x1x96xf32>
    %216 = vector.shape_cast %215 : vector<1x1x96xf32> to vector<1x96xf32>
    %217 = vector.broadcast %216 : vector<1x96xf32> to vector<16x96xf32>
    %218 = arith.addf %214, %217 : vector<16x96xf32>
    %219 = vector.shape_cast %218 : vector<16x96xf32> to vector<2x8x96xf32>
    %220 = vector.extract_strided_slice %219 {offsets = [0, 0, 0], sizes = [2, 8, 8], strides = [1, 1, 1]} : vector<2x8x96xf32> to vector<2x8x8xf32>
    %221 = vector.extract_strided_slice %219 {offsets = [0, 0, 32], sizes = [2, 8, 8], strides = [1, 1, 1]} : vector<2x8x96xf32> to vector<2x8x8xf32>
    %222 = vector.extract_strided_slice %219 {offsets = [0, 0, 64], sizes = [2, 8, 8], strides = [1, 1, 1]} : vector<2x8x96xf32> to vector<2x8x8xf32>
    %223 = arith.truncf %220 : vector<2x8x8xf32> to vector<2x8x8xbf16>
    %224 = arith.truncf %221 : vector<2x8x8xf32> to vector<2x8x8xbf16>
    "tpu.trace_start"() <{level = 10 : i32, message = "bqd,bkd->bqk"}> : () -> ()
    %cst_89 = arith.constant dense<0.000000e+00> : vector<2x8x8xf32>
    %225 = tpu.matmul %223, %224, %cst_89 {dimension_numbers = #tpu.dot_dimension_numbers<[2], [2], [1], [1], [0, 0, 0, 1, 1, 1], [0], [0]>} : vector<2x8x8xbf16>, vector<2x8x8xbf16>, vector<2x8x8xf32> -> vector<2x8x8xf32>
    "tpu.trace_stop"() : () -> ()
    %226 = arith.addf %225, %28 : vector<2x8x8xf32>
    %cst_90 = arith.constant dense<0xFF800000> : vector<2x8xf32>
    %227 = vector.multi_reduction <maximumf>, %226, %cst_90 [2] : vector<2x8x8xf32> to vector<2x8xf32>
    %228 = vector.shape_cast %227 : vector<2x8xf32> to vector<2x8x1xf32>
    %229 = vector.broadcast %228 : vector<2x8x1xf32> to vector<2x8x8xf32>
    %230 = arith.subf %226, %229 : vector<2x8x8xf32>
    %231 = math.exp %230 : vector<2x8x8xf32>
    %cst_91 = arith.constant dense<0.000000e+00> : vector<2x8xf32>
    %232 = vector.multi_reduction <add>, %231, %cst_91 [2] : vector<2x8x8xf32> to vector<2x8xf32>
    %233 = vector.shape_cast %232 : vector<2x8xf32> to vector<2x8x1xf32>
    %234 = tpu.reciprocal %233 {approx = true} : vector<2x8x1xf32> -> vector<2x8x1xf32>
    %235 = vector.broadcast %234 : vector<2x8x1xf32> to vector<2x8x8xf32>
    %236 = arith.mulf %231, %235 : vector<2x8x8xf32>
    %237 = arith.truncf %236 : vector<2x8x8xf32> to vector<2x8x8xbf16>
    %238 = arith.truncf %222 : vector<2x8x8xf32> to vector<2x8x8xbf16>
    "tpu.trace_start"() <{level = 10 : i32, message = "bqk,bkd->bqd"}> : () -> ()
    %cst_92 = arith.constant dense<0.000000e+00> : vector<2x8x8xf32>
    %239 = tpu.matmul %237, %238, %cst_92 {dimension_numbers = #tpu.dot_dimension_numbers<[2], [1], [1], [2], [0, 0, 0, 1, 1, 2], [0], [0]>} : vector<2x8x8xbf16>, vector<2x8x8xbf16>, vector<2x8x8xf32> -> vector<2x8x8xf32>
    "tpu.trace_stop"() : () -> ()
    %240 = vector.extract_strided_slice %219 {offsets = [0, 0, 8], sizes = [2, 8, 8], strides = [1, 1, 1]} : vector<2x8x96xf32> to vector<2x8x8xf32>
    %241 = vector.extract_strided_slice %219 {offsets = [0, 0, 40], sizes = [2, 8, 8], strides = [1, 1, 1]} : vector<2x8x96xf32> to vector<2x8x8xf32>
    %242 = vector.extract_strided_slice %219 {offsets = [0, 0, 72], sizes = [2, 8, 8], strides = [1, 1, 1]} : vector<2x8x96xf32> to vector<2x8x8xf32>
    %243 = arith.truncf %240 : vector<2x8x8xf32> to vector<2x8x8xbf16>
    %244 = arith.truncf %241 : vector<2x8x8xf32> to vector<2x8x8xbf16>
    "tpu.trace_start"() <{level = 10 : i32, message = "bqd,bkd->bqk"}> : () -> ()
    %cst_93 = arith.constant dense<0.000000e+00> : vector<2x8x8xf32>
    %245 = tpu.matmul %243, %244, %cst_93 {dimension_numbers = #tpu.dot_dimension_numbers<[2], [2], [1], [1], [0, 0, 0, 1, 1, 1], [0], [0]>} : vector<2x8x8xbf16>, vector<2x8x8xbf16>, vector<2x8x8xf32> -> vector<2x8x8xf32>
    "tpu.trace_stop"() : () -> ()
    %246 = arith.addf %245, %28 : vector<2x8x8xf32>
    %cst_94 = arith.constant dense<0xFF800000> : vector<2x8xf32>
    %247 = vector.multi_reduction <maximumf>, %246, %cst_94 [2] : vector<2x8x8xf32> to vector<2x8xf32>
    %248 = vector.shape_cast %247 : vector<2x8xf32> to vector<2x8x1xf32>
    %249 = vector.broadcast %248 : vector<2x8x1xf32> to vector<2x8x8xf32>
    %250 = arith.subf %246, %249 : vector<2x8x8xf32>
    %251 = math.exp %250 : vector<2x8x8xf32>
    %cst_95 = arith.constant dense<0.000000e+00> : vector<2x8xf32>
    %252 = vector.multi_reduction <add>, %251, %cst_95 [2] : vector<2x8x8xf32> to vector<2x8xf32>
    %253 = vector.shape_cast %252 : vector<2x8xf32> to vector<2x8x1xf32>
    %254 = tpu.reciprocal %253 {approx = true} : vector<2x8x1xf32> -> vector<2x8x1xf32>
    %255 = vector.broadcast %254 : vector<2x8x1xf32> to vector<2x8x8xf32>
    %256 = arith.mulf %251, %255 : vector<2x8x8xf32>
    %257 = arith.truncf %256 : vector<2x8x8xf32> to vector<2x8x8xbf16>
    %258 = arith.truncf %242 : vector<2x8x8xf32> to vector<2x8x8xbf16>
    "tpu.trace_start"() <{level = 10 : i32, message = "bqk,bkd->bqd"}> : () -> ()
    %cst_96 = arith.constant dense<0.000000e+00> : vector<2x8x8xf32>
    %259 = tpu.matmul %257, %258, %cst_96 {dimension_numbers = #tpu.dot_dimension_numbers<[2], [1], [1], [2], [0, 0, 0, 1, 1, 2], [0], [0]>} : vector<2x8x8xbf16>, vector<2x8x8xbf16>, vector<2x8x8xf32> -> vector<2x8x8xf32>
    "tpu.trace_stop"() : () -> ()
    %260 = vector.extract_strided_slice %219 {offsets = [0, 0, 16], sizes = [2, 8, 8], strides = [1, 1, 1]} : vector<2x8x96xf32> to vector<2x8x8xf32>
    %261 = vector.extract_strided_slice %219 {offsets = [0, 0, 48], sizes = [2, 8, 8], strides = [1, 1, 1]} : vector<2x8x96xf32> to vector<2x8x8xf32>
    %262 = vector.extract_strided_slice %219 {offsets = [0, 0, 80], sizes = [2, 8, 8], strides = [1, 1, 1]} : vector<2x8x96xf32> to vector<2x8x8xf32>
    %263 = arith.truncf %260 : vector<2x8x8xf32> to vector<2x8x8xbf16>
    %264 = arith.truncf %261 : vector<2x8x8xf32> to vector<2x8x8xbf16>
    "tpu.trace_start"() <{level = 10 : i32, message = "bqd,bkd->bqk"}> : () -> ()
    %cst_97 = arith.constant dense<0.000000e+00> : vector<2x8x8xf32>
    %265 = tpu.matmul %263, %264, %cst_97 {dimension_numbers = #tpu.dot_dimension_numbers<[2], [2], [1], [1], [0, 0, 0, 1, 1, 1], [0], [0]>} : vector<2x8x8xbf16>, vector<2x8x8xbf16>, vector<2x8x8xf32> -> vector<2x8x8xf32>
    "tpu.trace_stop"() : () -> ()
    %266 = arith.addf %265, %28 : vector<2x8x8xf32>
    %cst_98 = arith.constant dense<0xFF800000> : vector<2x8xf32>
    %267 = vector.multi_reduction <maximumf>, %266, %cst_98 [2] : vector<2x8x8xf32> to vector<2x8xf32>
    %268 = vector.shape_cast %267 : vector<2x8xf32> to vector<2x8x1xf32>
    %269 = vector.broadcast %268 : vector<2x8x1xf32> to vector<2x8x8xf32>
    %270 = arith.subf %266, %269 : vector<2x8x8xf32>
    %271 = math.exp %270 : vector<2x8x8xf32>
    %cst_99 = arith.constant dense<0.000000e+00> : vector<2x8xf32>
    %272 = vector.multi_reduction <add>, %271, %cst_99 [2] : vector<2x8x8xf32> to vector<2x8xf32>
    %273 = vector.shape_cast %272 : vector<2x8xf32> to vector<2x8x1xf32>
    %274 = tpu.reciprocal %273 {approx = true} : vector<2x8x1xf32> -> vector<2x8x1xf32>
    %275 = vector.broadcast %274 : vector<2x8x1xf32> to vector<2x8x8xf32>
    %276 = arith.mulf %271, %275 : vector<2x8x8xf32>
    %277 = arith.truncf %276 : vector<2x8x8xf32> to vector<2x8x8xbf16>
    %278 = arith.truncf %262 : vector<2x8x8xf32> to vector<2x8x8xbf16>
    "tpu.trace_start"() <{level = 10 : i32, message = "bqk,bkd->bqd"}> : () -> ()
    %cst_100 = arith.constant dense<0.000000e+00> : vector<2x8x8xf32>
    %279 = tpu.matmul %277, %278, %cst_100 {dimension_numbers = #tpu.dot_dimension_numbers<[2], [1], [1], [2], [0, 0, 0, 1, 1, 2], [0], [0]>} : vector<2x8x8xbf16>, vector<2x8x8xbf16>, vector<2x8x8xf32> -> vector<2x8x8xf32>
    "tpu.trace_stop"() : () -> ()
    %280 = vector.extract_strided_slice %219 {offsets = [0, 0, 24], sizes = [2, 8, 8], strides = [1, 1, 1]} : vector<2x8x96xf32> to vector<2x8x8xf32>
    %281 = vector.extract_strided_slice %219 {offsets = [0, 0, 56], sizes = [2, 8, 8], strides = [1, 1, 1]} : vector<2x8x96xf32> to vector<2x8x8xf32>
    %282 = vector.extract_strided_slice %219 {offsets = [0, 0, 88], sizes = [2, 8, 8], strides = [1, 1, 1]} : vector<2x8x96xf32> to vector<2x8x8xf32>
    %283 = arith.truncf %280 : vector<2x8x8xf32> to vector<2x8x8xbf16>
    %284 = arith.truncf %281 : vector<2x8x8xf32> to vector<2x8x8xbf16>
    "tpu.trace_start"() <{level = 10 : i32, message = "bqd,bkd->bqk"}> : () -> ()
    %cst_101 = arith.constant dense<0.000000e+00> : vector<2x8x8xf32>
    %285 = tpu.matmul %283, %284, %cst_101 {dimension_numbers = #tpu.dot_dimension_numbers<[2], [2], [1], [1], [0, 0, 0, 1, 1, 1], [0], [0]>} : vector<2x8x8xbf16>, vector<2x8x8xbf16>, vector<2x8x8xf32> -> vector<2x8x8xf32>
    "tpu.trace_stop"() : () -> ()
    %286 = arith.addf %285, %28 : vector<2x8x8xf32>
    %cst_102 = arith.constant dense<0xFF800000> : vector<2x8xf32>
    %287 = vector.multi_reduction <maximumf>, %286, %cst_102 [2] : vector<2x8x8xf32> to vector<2x8xf32>
    %288 = vector.shape_cast %287 : vector<2x8xf32> to vector<2x8x1xf32>
    %289 = vector.broadcast %288 : vector<2x8x1xf32> to vector<2x8x8xf32>
    %290 = arith.subf %286, %289 : vector<2x8x8xf32>
    %291 = math.exp %290 : vector<2x8x8xf32>
    %cst_103 = arith.constant dense<0.000000e+00> : vector<2x8xf32>
    %292 = vector.multi_reduction <add>, %291, %cst_103 [2] : vector<2x8x8xf32> to vector<2x8xf32>
    %293 = vector.shape_cast %292 : vector<2x8xf32> to vector<2x8x1xf32>
    %294 = tpu.reciprocal %293 {approx = true} : vector<2x8x1xf32> -> vector<2x8x1xf32>
    %295 = vector.broadcast %294 : vector<2x8x1xf32> to vector<2x8x8xf32>
    %296 = arith.mulf %291, %295 : vector<2x8x8xf32>
    %297 = arith.truncf %296 : vector<2x8x8xf32> to vector<2x8x8xbf16>
    %298 = arith.truncf %282 : vector<2x8x8xf32> to vector<2x8x8xbf16>
    "tpu.trace_start"() <{level = 10 : i32, message = "bqk,bkd->bqd"}> : () -> ()
    %cst_104 = arith.constant dense<0.000000e+00> : vector<2x8x8xf32>
    %299 = tpu.matmul %297, %298, %cst_104 {dimension_numbers = #tpu.dot_dimension_numbers<[2], [1], [1], [2], [0, 0, 0, 1, 1, 2], [0], [0]>} : vector<2x8x8xbf16>, vector<2x8x8xbf16>, vector<2x8x8xf32> -> vector<2x8x8xf32>
    "tpu.trace_stop"() : () -> ()
    %300 = tpu.concatenate %239, %259, %279, %299 in 2 : vector<2x8x8xf32>, vector<2x8x8xf32>, vector<2x8x8xf32>, vector<2x8x8xf32> -> vector<2x8x32xf32>
    %301 = vector.shape_cast %300 : vector<2x8x32xf32> to vector<16x32xf32>
    %302 = arith.truncf %301 : vector<16x32xf32> to vector<16x32xbf16>
    %c1_105 = arith.constant 1 : index
    %c0_106 = arith.constant 0 : index
    %c0_107 = arith.constant 0 : index
    %303 = vector.load %arg6[%c1_105, %c0_106, %c0_107] : memref<2x32x32xbf16, #tpu.memory_space<vmem>>, vector<1x32x32xbf16>
    %304 = vector.shape_cast %303 : vector<1x32x32xbf16> to vector<32x32xbf16>
    %cst_108 = arith.constant dense<0.000000e+00> : vector<16x32xf32>
    %305 = tpu.matmul %302, %304, %cst_108 {dimension_numbers = #tpu.dot_dimension_numbers<[1], [0], [0], [1], [0, 0, 1, 1], [], []>} : vector<16x32xbf16>, vector<32x32xbf16>, vector<16x32xf32> -> vector<16x32xf32>
    %c1_109 = arith.constant 1 : index
    %c0_110 = arith.constant 0 : index
    %c0_111 = arith.constant 0 : index
    %306 = vector.load %arg7[%c1_109, %c0_110, %c0_111] : memref<2x1x32xf32, #tpu.memory_space<vmem>>, vector<1x1x32xf32>
    %307 = vector.shape_cast %306 : vector<1x1x32xf32> to vector<1x32xf32>
    %308 = vector.broadcast %307 : vector<1x32xf32> to vector<16x32xf32>
    %309 = arith.addf %305, %308 : vector<16x32xf32>
    %310 = arith.addf %309, %210 : vector<16x32xf32>
    %c1_112 = arith.constant 1 : index
    %c0_113 = arith.constant 0 : index
    %c0_114 = arith.constant 0 : index
    %311 = vector.load %arg8[%c1_112, %c0_113, %c0_114] : memref<2x1x32xf32, #tpu.memory_space<vmem>>, vector<1x1x32xf32>
    %312 = vector.shape_cast %311 : vector<1x1x32xf32> to vector<1x32xf32>
    %c1_115 = arith.constant 1 : index
    %c0_116 = arith.constant 0 : index
    %c0_117 = arith.constant 0 : index
    %313 = vector.load %arg9[%c1_115, %c0_116, %c0_117] : memref<2x1x32xf32, #tpu.memory_space<vmem>>, vector<1x1x32xf32>
    %314 = vector.shape_cast %313 : vector<1x1x32xf32> to vector<1x32xf32>
    %cst_118 = arith.constant dense<0.000000e+00> : vector<16xf32>
    %315 = vector.multi_reduction <add>, %310, %cst_118 [1] : vector<16x32xf32> to vector<16xf32>
    %316 = vector.shape_cast %315 : vector<16xf32> to vector<16x1xf32>
    %cst_119 = arith.constant 3.200000e+01 : f32
    %317 = vector.broadcast %cst_119 : f32 to vector<16x1xf32>
    %318 = arith.divf %316, %317 : vector<16x1xf32>
    %319 = vector.broadcast %318 : vector<16x1xf32> to vector<16x32xf32>
    %320 = arith.subf %310, %319 : vector<16x32xf32>
    %321 = arith.mulf %320, %320 : vector<16x32xf32>
    %cst_120 = arith.constant dense<0.000000e+00> : vector<16xf32>
    %322 = vector.multi_reduction <add>, %321, %cst_120 [1] : vector<16x32xf32> to vector<16xf32>
    %323 = vector.shape_cast %322 : vector<16xf32> to vector<16x1xf32>
    %cst_121 = arith.constant 3.200000e+01 : f32
    %324 = vector.broadcast %cst_121 : f32 to vector<16x1xf32>
    %325 = arith.divf %323, %324 : vector<16x1xf32>
    %326 = vector.broadcast %318 : vector<16x1xf32> to vector<16x32xf32>
    %327 = arith.subf %310, %326 : vector<16x32xf32>
    %cst_122 = arith.constant 9.99999996E-13 : f32
    %328 = vector.broadcast %cst_122 : f32 to vector<16x1xf32>
    %329 = arith.addf %325, %328 : vector<16x1xf32>
    %330 = math.rsqrt %329 : vector<16x1xf32>
    %331 = vector.broadcast %330 : vector<16x1xf32> to vector<16x32xf32>
    %332 = arith.mulf %327, %331 : vector<16x32xf32>
    %333 = vector.broadcast %312 : vector<1x32xf32> to vector<16x32xf32>
    %334 = arith.mulf %332, %333 : vector<16x32xf32>
    %335 = vector.broadcast %314 : vector<1x32xf32> to vector<16x32xf32>
    %336 = arith.addf %334, %335 : vector<16x32xf32>
    %337 = arith.truncf %336 : vector<16x32xf32> to vector<16x32xbf16>
    %c1_123 = arith.constant 1 : index
    %c0_124 = arith.constant 0 : index
    %c0_125 = arith.constant 0 : index
    %338 = vector.load %arg10[%c1_123, %c0_124, %c0_125] : memref<2x32x64xbf16, #tpu.memory_space<vmem>>, vector<1x32x64xbf16>
    %339 = vector.shape_cast %338 : vector<1x32x64xbf16> to vector<32x64xbf16>
    %cst_126 = arith.constant dense<0.000000e+00> : vector<16x64xf32>
    %340 = tpu.matmul %337, %339, %cst_126 {dimension_numbers = #tpu.dot_dimension_numbers<[1], [0], [0], [1], [0, 0, 1, 1], [], []>} : vector<16x32xbf16>, vector<32x64xbf16>, vector<16x64xf32> -> vector<16x64xf32>
    %c1_127 = arith.constant 1 : index
    %c0_128 = arith.constant 0 : index
    %c0_129 = arith.constant 0 : index
    %341 = vector.load %arg11[%c1_127, %c0_128, %c0_129] : memref<2x1x64xf32, #tpu.memory_space<vmem>>, vector<1x1x64xf32>
    %342 = vector.shape_cast %341 : vector<1x1x64xf32> to vector<1x64xf32>
    %343 = vector.broadcast %342 : vector<1x64xf32> to vector<16x64xf32>
    %344 = arith.addf %340, %343 : vector<16x64xf32>
    %cst_130 = arith.constant 5.000000e-01 : f32
    %345 = vector.broadcast %cst_130 : f32 to vector<16x64xf32>
    %346 = arith.mulf %345, %344 : vector<16x64xf32>
    %cst_131 = arith.constant 4.471500e-02 : f32
    %347 = vector.broadcast %cst_131 : f32 to vector<16x64xf32>
    %348 = arith.mulf %347, %344 : vector<16x64xf32>
    %349 = arith.mulf %348, %344 : vector<16x64xf32>
    %350 = arith.mulf %349, %344 : vector<16x64xf32>
    %351 = arith.addf %344, %350 : vector<16x64xf32>
    %cst_132 = arith.constant 0.797884583 : f32
    %352 = vector.broadcast %cst_132 : f32 to vector<16x64xf32>
    %353 = arith.mulf %352, %351 : vector<16x64xf32>
    %354 = math.tanh %353 : vector<16x64xf32>
    %cst_133 = arith.constant 1.000000e+00 : f32
    %355 = vector.broadcast %cst_133 : f32 to vector<16x64xf32>
    %356 = arith.addf %355, %354 : vector<16x64xf32>
    %357 = arith.mulf %346, %356 : vector<16x64xf32>
    %358 = arith.truncf %357 : vector<16x64xf32> to vector<16x64xbf16>
    %c1_134 = arith.constant 1 : index
    %c0_135 = arith.constant 0 : index
    %c0_136 = arith.constant 0 : index
    %359 = vector.load %arg12[%c1_134, %c0_135, %c0_136] : memref<2x64x32xbf16, #tpu.memory_space<vmem>>, vector<1x64x32xbf16>
    %360 = vector.shape_cast %359 : vector<1x64x32xbf16> to vector<64x32xbf16>
    %cst_137 = arith.constant dense<0.000000e+00> : vector<16x32xf32>
    %361 = tpu.matmul %358, %360, %cst_137 {dimension_numbers = #tpu.dot_dimension_numbers<[1], [0], [0], [1], [0, 0, 1, 1], [], []>} : vector<16x64xbf16>, vector<64x32xbf16>, vector<16x32xf32> -> vector<16x32xf32>
    %c1_138 = arith.constant 1 : index
    %c0_139 = arith.constant 0 : index
    %c0_140 = arith.constant 0 : index
    %362 = vector.load %arg13[%c1_138, %c0_139, %c0_140] : memref<2x1x32xf32, #tpu.memory_space<vmem>>, vector<1x1x32xf32>
    %363 = vector.shape_cast %362 : vector<1x1x32xf32> to vector<1x32xf32>
    %364 = vector.broadcast %363 : vector<1x32xf32> to vector<16x32xf32>
    %365 = arith.addf %361, %364 : vector<16x32xf32>
    %366 = arith.addf %365, %336 : vector<16x32xf32>
    %c1_141 = arith.constant 1 : index
    %c0_142 = arith.constant 0 : index
    %c0_143 = arith.constant 0 : index
    %367 = vector.load %arg14[%c1_141, %c0_142, %c0_143] : memref<2x1x32xf32, #tpu.memory_space<vmem>>, vector<1x1x32xf32>
    %368 = vector.shape_cast %367 : vector<1x1x32xf32> to vector<1x32xf32>
    %c1_144 = arith.constant 1 : index
    %c0_145 = arith.constant 0 : index
    %c0_146 = arith.constant 0 : index
    %369 = vector.load %arg15[%c1_144, %c0_145, %c0_146] : memref<2x1x32xf32, #tpu.memory_space<vmem>>, vector<1x1x32xf32>
    %370 = vector.shape_cast %369 : vector<1x1x32xf32> to vector<1x32xf32>
    %cst_147 = arith.constant dense<0.000000e+00> : vector<16xf32>
    %371 = vector.multi_reduction <add>, %366, %cst_147 [1] : vector<16x32xf32> to vector<16xf32>
    %372 = vector.shape_cast %371 : vector<16xf32> to vector<16x1xf32>
    %cst_148 = arith.constant 3.200000e+01 : f32
    %373 = vector.broadcast %cst_148 : f32 to vector<16x1xf32>
    %374 = arith.divf %372, %373 : vector<16x1xf32>
    %375 = vector.broadcast %374 : vector<16x1xf32> to vector<16x32xf32>
    %376 = arith.subf %366, %375 : vector<16x32xf32>
    %377 = arith.mulf %376, %376 : vector<16x32xf32>
    %cst_149 = arith.constant dense<0.000000e+00> : vector<16xf32>
    %378 = vector.multi_reduction <add>, %377, %cst_149 [1] : vector<16x32xf32> to vector<16xf32>
    %379 = vector.shape_cast %378 : vector<16xf32> to vector<16x1xf32>
    %cst_150 = arith.constant 3.200000e+01 : f32
    %380 = vector.broadcast %cst_150 : f32 to vector<16x1xf32>
    %381 = arith.divf %379, %380 : vector<16x1xf32>
    %382 = vector.broadcast %374 : vector<16x1xf32> to vector<16x32xf32>
    %383 = arith.subf %366, %382 : vector<16x32xf32>
    %cst_151 = arith.constant 9.99999996E-13 : f32
    %384 = vector.broadcast %cst_151 : f32 to vector<16x1xf32>
    %385 = arith.addf %381, %384 : vector<16x1xf32>
    %386 = math.rsqrt %385 : vector<16x1xf32>
    %387 = vector.broadcast %386 : vector<16x1xf32> to vector<16x32xf32>
    %388 = arith.mulf %383, %387 : vector<16x32xf32>
    %389 = vector.broadcast %368 : vector<1x32xf32> to vector<16x32xf32>
    %390 = arith.mulf %388, %389 : vector<16x32xf32>
    %391 = vector.broadcast %370 : vector<1x32xf32> to vector<16x32xf32>
    %392 = arith.addf %390, %391 : vector<16x32xf32>
    %393 = vector.shape_cast %392 : vector<16x32xf32> to vector<2x8x32xf32>
    %394 = vector.extract_strided_slice %393 {offsets = [0, 0, 0], sizes = [2, 1, 32], strides = [1, 1, 1]} : vector<2x8x32xf32> to vector<2x1x32xf32>
    %395 = vector.shape_cast %394 : vector<2x1x32xf32> to vector<2x32xf32>
    %396 = arith.truncf %395 : vector<2x32xf32> to vector<2x32xbf16>
    %c0_152 = arith.constant 0 : index
    %c0_153 = arith.constant 0 : index
    %397 = vector.load %arg16[%c0_152, %c0_153] : memref<32x32xbf16, #tpu.memory_space<vmem>>, vector<32x32xbf16>
    %cst_154 = arith.constant dense<0.000000e+00> : vector<2x32xf32>
    %398 = tpu.matmul %396, %397, %cst_154 {dimension_numbers = #tpu.dot_dimension_numbers<[1], [0], [0], [1], [0, 0, 1, 1], [], []>} : vector<2x32xbf16>, vector<32x32xbf16>, vector<2x32xf32> -> vector<2x32xf32>
    %c0_155 = arith.constant 0 : index
    %c0_156 = arith.constant 0 : index
    %399 = vector.load %arg17[%c0_155, %c0_156] : memref<1x32xf32, #tpu.memory_space<vmem>>, vector<1x32xf32>
    %400 = vector.broadcast %399 : vector<1x32xf32> to vector<2x32xf32>
    %401 = arith.addf %398, %400 : vector<2x32xf32>
    %402 = math.tanh %401 : vector<2x32xf32>
    %403 = arith.truncf %402 : vector<2x32xf32> to vector<2x32xbf16>
    %c0_157 = arith.constant 0 : index
    %c0_158 = arith.constant 0 : index
    %404 = vector.load %arg18[%c0_157, %c0_158] : memref<32x128xbf16, #tpu.memory_space<vmem>>, vector<32x128xbf16>
    %cst_159 = arith.constant dense<0.000000e+00> : vector<2x128xf32>
    %405 = tpu.matmul %403, %404, %cst_159 {dimension_numbers = #tpu.dot_dimension_numbers<[1], [0], [0], [1], [0, 0, 1, 1], [], []>} : vector<2x32xbf16>, vector<32x128xbf16>, vector<2x128xf32> -> vector<2x128xf32>
    %c0_160 = arith.constant 0 : index
    %c0_161 = arith.constant 0 : index
    %406 = vector.load %arg19[%c0_160, %c0_161] : memref<1x128xf32, #tpu.memory_space<vmem>>, vector<1x128xf32>
    %407 = vector.broadcast %406 : vector<1x128xf32> to vector<2x128xf32>
    %408 = arith.addf %405, %407 : vector<2x128xf32>
    %cst_162 = arith.constant 0.000000e+00 : f32
    %409 = vector.broadcast %cst_162 : f32 to vector<2x128xf32>
    %410 = arith.subf %409, %408 : vector<2x128xf32>
    %411 = math.exp %410 : vector<2x128xf32>
    %cst_163 = arith.constant 1.000000e+00 : f32
    %412 = vector.broadcast %cst_163 : f32 to vector<2x128xf32>
    %413 = arith.addf %412, %411 : vector<2x128xf32>
    %cst_164 = arith.constant 1.000000e+00 : f32
    %414 = vector.broadcast %cst_164 : f32 to vector<2x128xf32>
    %415 = arith.divf %414, %413 : vector<2x128xf32>
    %c0_165 = arith.constant 0 : index
    %c0_166 = arith.constant 0 : index
    %416 = vector.load %arg20[%c0_165, %c0_166] : memref<2x128xf32, #tpu.memory_space<vmem>>, vector<2x128xf32>
    tpu.vector_store %arg20[%c0_165, %c0_166], %415 {strides = array<i32>} : memref<2x128xf32, #tpu.memory_space<vmem>>, vector<2x128xf32>,
    return
  }
}

</mosaic_0001>

<bundles_post_ra>
// kernel: hla_predictor_forward.1
= control target key start
LH: loop header
LB: loop body
LE: loop exit
PB: predicated region body
PF: predicated region fallthrough
CT: control target
= control target key end

     0   :  { %vm70_vm0 = vcmask 261120   ;;  %v3580_v14 = vmov 0.0   ;;  %vm3581_vm1 = vmmov 0   ;;  %vm201_vm2 = vcmask 64512   ;;  %s3584_s29 = smov 88   ;;  %s4345_s21 = smov 80   ;;  %s4308_s0 = inlined_call_operand.vmem [shape: f32[2,8,32], index: 0, kind: input, shape index: {}]   ;;  %s4309_s4 = inlined_call_operand.vmem [shape: bf16[2,32,96], index: 4, kind: input, shape index: {}]   ;;  %s4310_s2 = inlined_call_operand.vmem [shape: f32[1,32], index: 2, kind: input, shape index: {}]   ;;  %s4311_s3 = inlined_call_operand.vmem [shape: f32[1,32], index: 3, kind: input, shape index: {}]   ;;  %s4312_s5 = inlined_call_operand.vmem [shape: f32[2,1,96], index: 5, kind: input, shape index: {}]   ;;  %s4313_s1 = inlined_call_operand.vmem [shape: f32[2,1,8], index: 1, kind: input, shape index: {}]   ;;  %s4314_s6 = inlined_call_operand.vmem [shape: bf16[2,32,32], index: 6, kind: input, shape index: {}]   ;;  %s4315_s7 = inlined_call_operand.vmem [shape: f32[2,1,32], index: 7, kind: input, shape index: {}]   ;;  %s4316_s10 = inlined_call_operand.vmem [shape: bf16[2,32,64], index: 10, kind: input, shape index: {}]   ;;  %s4317_s8 = inlined_call_operand.vmem [shape: f32[2,1,32], index: 8, kind: input, shape index: {}]   ;;  %s4318_s9 = inlined_call_operand.vmem [shape: f32[2,1,32], index: 9, kind: input, shape index: {}]   ;;  %s4319_s12 = inlined_call_operand.vmem [shape: bf16[2,64,32], index: 12, kind: input, shape index: {}]   ;;  %s4320_s11 = inlined_call_operand.vmem [shape: f32[2,1,64], index: 11, kind: input, shape index: {}]   ;;  %s4321_s13 = inlined_call_operand.vmem [shape: f32[2,1,32], index: 13, kind: input, shape index: {}]   ;;  %s4322_s14 = inlined_call_operand.vmem [shape: f32[2,1,32], index: 14, kind: input, shape index: {}]   ;;  %s4323_s15 = inlined_call_operand.vmem [shape: f32[2,1,32], index: 15, kind: input, shape index: {}]   ;;  %s4324_s16 = inlined_call_operand.vmem [shape: bf16[32,32], index: 16, kind: input, shape index: {}]   ;;  %s4325_s18 = inlined_call_operand.vmem [shape: bf16[32,128], index: 18, kind: input, shape index: {}]   ;;  %s4326_s17 = inlined_call_operand.vmem [shape: f32[1,32], index: 17, kind: input, shape index: {}]   ;;  %s4327_s19 = inlined_call_operand.vmem [shape: f32[1,128], index: 19, kind: input, shape index: {}]   ;;  %s4328_s20 = inlined_call_operand.vmem [shape: f32[2,128], index: 20, kind: output, shape index: {}]  }
   0x1   :  { %4347 = sst [smem:[#allocation2_spill]] %s4308_s0  ;;  %3130 = vmatprep.subr.bf16.mxu0 %v3580_v14  ;;  %3134 = vmatprep.mubr.msk.bf16.mxu0 %vm3581_vm1, %v3580_v14  ;;  %v3766_v47 = vld [vmem:[%s4313_s1] ss:$0 sm:$0xff]  ;;  %v3771_v49 = vld [vmem:[%s4313_s1 + $0x1] ss:$0 sm:$0xff]  ;;  %vm326_vm3 = vcmask 1043456  }
   0x2   :  { %4348 = sst [smem:[#allocation3_spill]] %s4309_s4  ;;  %s4352_s23 = sld [smem:[#allocation2_spill]]  ;;  %3138 = vmatprep.subr.bf16.mxu1 %v3580_v14  ;;  %3140 = vmatprep.mubr.msk.bf16.mxu1 %vm3581_vm1, %v3580_v14  ;;  %vm1104_vm4 = vcmask 130048   ;;  %vm1107_vm5 = vcmask 195584   ;;  %vm1350_vm6 = vcmask 523264   ;;  %vm2779_vm7 = vcmask 1041409  }
   0x3   :  { %4349 = sst [smem:[#allocation4_spill]] %s4310_s2  ;;  %s4353_s26 = sld [smem:[#allocation3_spill]] }
   0x4   :  { %4350 = sst [smem:[#allocation5_spill]] %s4311_s3  ;;  %s4354_s30 = sld [smem:[#allocation4_spill]] }
   0x5   :  { %4351 = sst [smem:[#allocation6_spill]] %s4312_s5  ;;  %s4355_s4 = sld [smem:[#allocation5_spill]] }
   0x6   :  { %s4356_s24 = sld [smem:[#allocation6_spill]]  ;;  %s3582_s2 = smov 96  }
   0x7   :  { %s3583_s5 = smov 64   ;;  %s3586_s0 = smov 56  }
   0x8   :  { %v66_v0 = vld [vmem:[%s4352_s23] sm:$0xff]  ;;  %v67_v1 = vld [vmem:[%s4352_s23 + $0x8] sm:$0xff]  ;;  %s4341_s22 = smov 48   ;;  %s4339_s23 = smov 72  }
   0x9   :  { %v71_v2 = vsel %vm70_vm0, %v66_v0, 0.0  ;;  %v74_v3 = vsel %vm70_vm0, %v67_v1, 0.0  ;;  %v3456_v15 = vld [vmem:[%s4353_s26] sm:$0xff]   ;;  %v3457_v16 = vld [vmem:[%s4353_s26 + $0x8] sm:$0xff]   ;;  %s4336_s25 = smov 104   ;;  %s4334_s3 = smov 40  }
   0xa   :  { %72 = vadd.xlane.f32.xlu0 %v71_v2  ;;  %3131 = vmatpush3.bf16.msra.mxu0 %v3456_v15  ;;  %v2916_v25 = vld [vmem:[%s4354_s30] ss:$0 sm:$0xff]  ;;  %s3585_s30 = smov 120   ;;  %s4333_s27 = smov 8  }
   0xb   :  { %3132 = vmatprep.subr.bf16.mxu0 %v3580_v14  ;;  %v2917_v29 = vld [vmem:[%s4355_s4] ss:$0 sm:$0xff]  ;;  %s4343_s4 = smov 112   ;;  %s4332_s28 = smov 16  }
   0xc   :  { %v2920_v34 = vld [vmem:[%s4356_s24] ss:$0 sm:$0xff] }
   0xe   :  { %75 = vadd.xlane.f32.xlu0 %v74_v3  ;;  %3133 = vmatpush3.bf16.msra.mxu0 %v3457_v16 }
   0xf   :  { %3144 = vmatprep.subr.bf16.mxu0 %v3580_v14 }
  0x97   :  { %v73_v4 = vpop.xlane.xlu0 %72 }
  0x98   :  { %v78_v5 = vmul.f32 0.03125, %v73_v4 }
  0x9a   :  { %v80_v6 = vsub.f32 %v66_v0, %v78_v5 }
  0x9b   :  { %v76_v7 = vpop.xlane.xlu0 %75 }
  0x9c   :  { %v79_v8 = vmul.f32 0.03125, %v76_v7  ;;  %v82_v9 = vmul.f32 %v80_v6, %v80_v6 }
  0x9e   :  { %v81_v10 = vsub.f32 %v67_v1, %v79_v8  ;;  %v84_v11 = vsel %vm70_vm0, %v82_v9, 0.0 }
  0x9f   :  { %85 = vadd.xlane.f32.xlu1 %v84_v11 }
  0xa0   :  { %v83_v12 = vmul.f32 %v81_v10, %v81_v10 }
  0xa2   :  { %v87_v13 = vsel %vm70_vm0, %v83_v12, 0.0 }
  0xa3   :  { %88 = vadd.xlane.f32.xlu1 %v87_v13 }
 0x12c   :  { %v86_v17 = vpop.xlane.xlu1 %85 }
 0x12d   :  { %v90_v18 = vmul.f32 0.03125, %v86_v17 }
 0x12f   :  { %v92_v19 = vadd.f32 1e-12, %v90_v18 }
 0x130   :  { %v89_v20 = vpop.xlane.xlu1 %88 }
 0x131   :  { %3480 = vrsqrt.f32 %v92_v19  ;;  %v91_v21 = vmul.f32 0.03125, %v89_v20 }
 0x133   :  { %v93_v22 = vadd.f32 1e-12, %v91_v21 }
 0x135   :  { %3482 = vrsqrt.f32 %v93_v22 }
 0x13b   :  { %v3481_v23 = vpop.eup %3480 }
 0x13c   :  { %v96_v24 = vmul.f32 %v3481_v23, %v80_v6 }
 0x13e   :  { %v104_v28 = vmul.f32 %v2916_v25, %v96_v24 }
 0x13f   :  { %v3483_v26 = vpop.eup %3482 }
 0x140   :  { %v97_v27 = vmul.f32 %v3483_v26, %v81_v10  ;;  %v3731_v31 = vadd.f32 %v2917_v29, %v104_v28 }
 0x142   :  { %v105_v30 = vmul.f32 %v2916_v25, %v97_v27 }
 0x144   :  { %v3733_v32 = vadd.f32 %v2917_v29, %v105_v30 }
 0x146   :  { %v128_v33 = vpack.c.bf16 %v3733_v32, %v3731_v31 }
 0x148   :  { %3135 = vmatmul.mubr.msk.bf16.vlgmr.msra.gmra.mrb[0].mxu0 %vm70_vm0, %v128_v33 }
 0x149   :  { %3146 = vmatprep.mubr.msk.bf16.mxu0 %vm3581_vm1, %v3580_v14 }
 0x21b   :  { %v189_v35 = vpop.f32.mrb[0].mxu0 }
 0x21c   :  { %v190_v36 = vadd.f32 %v2920_v34, %v189_v35  ;;  %v3136_v37 = vpop.f32.mrb[1].mxu0 }
 0x21d   :  { %v192_v38 = vpop.f32.mrb[2].mxu0 }
 0x21e   :  { %v3743_v39 = vpack.c.bf16 %v190_v36, %v190_v36  ;;  %v193_v40 = vadd.f32 %v2920_v34, %v192_v38  ;;  %v3137_v41 = vpop.f32.mrb[3].mxu0 }
 0x220   :  { %v3745_v42 = vpack.c.bf16 %v193_v40, %v193_v40  ;;  %199 = vrot.lane.b32.xlu0 %v3743_v39, %s3582_s2 }
 0x222   :  { %249 = vrot.lane.b32.xlu1 %v3745_v42, %s3582_s2 }
 0x292   :  { %v200_v43 = vpop.permute.xlu0 %199 }
 0x293   :  { %v206_v44 = vsel %vm201_vm2, %v200_v43, 0 }
 0x294   :  { %3139 = vmatpush3.bf16.xpose.msra.mxu1 %v206_v44  ;;  %v250_v45 = vpop.permute.xlu1 %249 }
 0x295   :  { %v255_v46 = vsel %vm201_vm2, %v250_v45, 0  ;;  %3150 = vmatprep.subr.bf16.mxu1 %v3580_v14 }
 0x296   :  { %3145 = vmatpush3.bf16.xpose.msra.mxu0 %v255_v46 }
 0x297   :  { %3156 = vmatprep.subr.bf16.mxu0 %v3580_v14 }
 0x29b   :  { %3141 = vmatmul.mubr.msk.bf16.vlgmr.msra.gmra.mrb[0].mxu1 %vm201_vm2, %v3743_v39 }
 0x29c   :  { %3152 = vmatprep.mubr.msk.bf16.mxu1 %vm3581_vm1, %v3580_v14 }
 0x29d   :  { %3147 = vmatmul.mubr.msk.bf16.vlgmr.msra.gmra.mrb[4].mxu0 %vm201_vm2, %v3745_v42 }
 0x29e   :  { %3158 = vmatprep.mubr.msk.bf16.mxu0 %vm3581_vm1, %v3580_v14 }
 0x36e   :  { %v242_v48 = vpop.f32.mrb[0].mxu1 }
 0x36f   :  { %v243_v50 = vadd.f32 %v3766_v47, %v242_v48  ;;  %v3142_v51 = vpop.f32.mrb[1].mxu1 }
 0x370   :  { %v245_v52 = vpop.f32.mrb[2].mxu1  ;;  %v291_v53 = vpop.f32.mrb[4].mxu0 }
 0x371   :  { %v292_v54 = vadd.f32 %v3771_v49, %v291_v53  ;;  %v3143_v55 = vpop.f32.mrb[3].mxu1  ;;  %v3148_v56 = vpop.f32.mrb[5].mxu0  ;;  %v297_v57 = vsel %vm201_vm2, %v243_v50, -inf }
 0x372   :  { %298 = vmax.xlane.f32.xlu1 %v297_v57  ;;  %v294_v58 = vpop.f32.mrb[6].mxu0 }
 0x373   :  { %v3149_v59 = vpop.f32.mrb[7].mxu0  ;;  %v300_v60 = vsel %vm201_vm2, %v292_v54, -inf }
 0x374   :  { %301 = vmax.xlane.f32.xlu0 %v300_v60 }
 0x383   :  { %370 = vrot.lane.b32.xlu1 %v3745_v42, %s3583_s5 }
 0x387   :  { %420 = vrot.lane.b32.xlu1 %v3743_v39, %s3584_s29 }
 0x3ff   :  { %v299_v61 = vpop.xlane.xlu1 %298 }
 0x400   :  { %v303_v62 = vsub.f32 %v243_v50, %v299_v61 }
 0x401   :  { %v302_v63 = vpop.xlane.xlu0 %301 }
 0x402   :  { %v305_v0 = vmul.f32 1.442695, %v303_v62  ;;  %v304_v1 = vsub.f32 %v292_v54, %v302_v63 }
 0x403   :  { %v371_v2 = vpop.permute.xlu1 %370 }
 0x404   :  { %3484 = vpow2.f32 %v305_v0  ;;  %v307_v3 = vmul.f32 1.442695, %v304_v1  ;;  %v376_v4 = vsel %vm326_vm3, %v371_v2, 0 }
 0x405   :  { %3157 = vmatpush3.bf16.msra.mxu0 %v376_v4 }
 0x406   :  { %3486 = vpow2.f32 %v307_v3  ;;  %3168 = vmatprep.subr.bf16.mxu0 %v3580_v14 }
 0x407   :  { %v421_v9 = vpop.permute.xlu1 %420 }
 0x408   :  { %v426_v21 = vsel %vm201_vm2, %v421_v9, 0 }
 0x40e   :  { %v3485_v5 = vpop.eup %3484 }
 0x40f   :  { %v309_v6 = vsel %vm201_vm2, %v3485_v5, 0.0 }
 0x410   :  { %v3487_v7 = vpop.eup %3486  ;;  %310 = vadd.xlane.f32.xlu0 %v309_v6 }
 0x411   :  { %v312_v8 = vsel %vm201_vm2, %v3487_v7, 0.0 }
 0x412   :  { %313 = vadd.xlane.f32.xlu1 %v312_v8 }
 0x423   :  { %470 = vrot.lane.b32.xlu1 %v3745_v42, %s3584_s29 }
 0x426   :  { %321 = vrot.lane.b32.xlu0 %v3743_v39, %s3583_s5 }
 0x427   :  { %468 = vrot.lane.b32.xlu1 %v3745_v42, %s3585_s30 }
 0x42a   :  { %418 = vrot.lane.b32.xlu0 %v3743_v39, %s3585_s30 }
 0x49d   :  { %v311_v10 = vpop.xlane.xlu0 %310 }
 0x49e   :  { %3488 = vrcp.f32 %v311_v10 }
 0x49f   :  { %v314_v11 = vpop.xlane.xlu1 %313 }
 0x4a0   :  { %3490 = vrcp.f32 %v314_v11 }
 0x4a1   :  { %v322_v12 = vpop.permute.xlu0 %321 }
 0x4a2   :  { %v328_v13 = vsel %vm326_vm3, %v322_v12, 0 }
 0x4a3   :  { %3151 = vmatpush3.bf16.msra.mxu1 %v328_v13  ;;  %v471_v20 = vpop.permute.xlu1 %470 }
 0x4a4   :  { %3162 = vmatprep.subr.bf16.mxu1 %v3580_v14  ;;  %v476_v23 = vsel %vm201_vm2, %v471_v20, 0 }
 0x4a5   :  { %v419_v24 = vpop.permute.xlu0 %418 }
 0x4a7   :  { %v469_v25 = vpop.permute.xlu1 %468 }
 0x4a8   :  { %v3489_v15 = vpop.eup %3488 }
 0x4a9   :  { %v317_v16 = vmul.f32 %v3489_v15, %v3485_v5 }
 0x4aa   :  { %v3491_v17 = vpop.eup %3490 }
 0x4ab   :  { %v318_v18 = vmul.f32 %v3491_v17, %v3487_v7  ;;  %v319_v19 = vpack.c.bf16 %v317_v16, %v317_v16 }
 0x4ad   :  { %3153 = vmatmul.mubr.msk.bf16.vlgmr.msra.gmra.mrb[4].mxu1 %vm201_vm2, %v319_v19  ;;  %v320_v22 = vpack.c.bf16 %v318_v18, %v318_v18 }
 0x4ae   :  { %3163 = vmatpush3.bf16.xpose.msra.mxu1 %v426_v21  ;;  %3164 = vmatprep.mubr.msk.bf16.mxu1 %vm3581_vm1, %v3580_v14 }
 0x4af   :  { %3159 = vmatmul.mubr.msk.bf16.vlgmr.msra.gmra.mrb[8].mxu0 %vm201_vm2, %v320_v22  ;;  %3174 = vmatprep.subr.bf16.mxu1 %v3580_v14 }
 0x4b0   :  { %3169 = vmatpush3.bf16.xpose.msra.mxu0 %v476_v23  ;;  %3170 = vmatprep.mubr.msk.bf16.mxu0 %vm3581_vm1, %v3580_v14 }
 0x4b1   :  { %3180 = vmatprep.subr.bf16.mxu0 %v3580_v14 }
 0x4b5   :  { %3165 = vmatmul.mubr.msk.bf16.vlgmr.msra.gmra.mrb[8].mxu1 %vm201_vm2, %v419_v24 }
 0x4b6   :  { %3176 = vmatprep.mubr.msk.bf16.mxu1 %vm3581_vm1, %v3580_v14 }
 0x4b7   :  { %3171 = vmatmul.mubr.msk.bf16.vlgmr.msra.gmra.mrb[12].mxu0 %vm201_vm2, %v469_v25 }
 0x4b8   :  { %3182 = vmatprep.mubr.msk.bf16.mxu0 %vm3581_vm1, %v3580_v14 }
 0x580   :  { %v3811_v26 = vpop.f32.mrb[4].mxu1 }
 0x581   :  { %v3154_v27 = vpop.f32.mrb[5].mxu1 }
 0x582   :  { %v367_v28 = vpop.f32.mrb[6].mxu1  ;;  %v3813_v29 = vpop.f32.mrb[8].mxu0 }
 0x583   :  { %v3155_v30 = vpop.f32.mrb[7].mxu1  ;;  %v3160_v33 = vpop.f32.mrb[9].mxu0 }
 0x584   :  { %v415_v34 = vpop.f32.mrb[10].mxu0 }
 0x585   :  { %v3161_v35 = vpop.f32.mrb[11].mxu0 }
 0x588   :  { %v462_v36 = vpop.f32.mrb[8].mxu1 }
 0x589   :  { %v463_v37 = vadd.f32 %v3766_v47, %v462_v36  ;;  %v3166_v38 = vpop.f32.mrb[9].mxu1 }
 0x58a   :  { %v465_v40 = vpop.f32.mrb[10].mxu1  ;;  %v512_v41 = vpop.f32.mrb[12].mxu0 }
 0x58b   :  { %v513_v43 = vadd.f32 %v3771_v49, %v512_v41  ;;  %v3167_v44 = vpop.f32.mrb[11].mxu1  ;;  %v3172_v45 = vpop.f32.mrb[13].mxu0  ;;  %v518_v46 = vsel %vm201_vm2, %v463_v37, -inf }
 0x58c   :  { %519 = vmax.xlane.f32.xlu0 %v518_v46  ;;  %v515_v48 = vpop.f32.mrb[14].mxu0 }
 0x58d   :  { %v3173_v50 = vpop.f32.mrb[15].mxu0  ;;  %v521_v51 = vsel %vm201_vm2, %v513_v43, -inf }
 0x58e   :  { %522 = vmax.xlane.f32.xlu1 %v521_v51 }
 0x59f   :  { %590 = vrot.lane.b32.xlu1 %v3745_v42, %s3586_s0 }
 0x5a3   :  { %640 = vrot.lane.b32.xlu1 %v3743_v39, %s4345_s21 }
 0x5a7   :  { %690 = vrot.lane.b32.xlu1 %v3745_v42, %s4345_s21 }
 0x5ab   :  { %688 = vrot.lane.b32.xlu1 %v3745_v42, %s4343_s4 }
 0x619   :  { %v520_v52 = vpop.xlane.xlu0 %519 }
 0x61a   :  { %v524_v53 = vsub.f32 %v463_v37, %v520_v52 }
 0x61b   :  { %v523_v54 = vpop.xlane.xlu1 %522 }
 0x61c   :  { %v526_v55 = vmul.f32 1.442695, %v524_v53  ;;  %v525_v56 = vsub.f32 %v513_v43, %v523_v54 }
 0x61e   :  { %3492 = vpow2.f32 %v526_v55  ;;  %v528_v57 = vmul.f32 1.442695, %v525_v56 }
 0x61f   :  { %v591_v58 = vpop.permute.xlu1 %590 }
 0x620   :  { %3494 = vpow2.f32 %v528_v57  ;;  %v596_v59 = vsel %vm326_vm3, %v591_v58, 0 }
 0x621   :  { %3181 = vmatpush3.bf16.msra.mxu0 %v596_v59 }
 0x622   :  { %3192 = vmatprep.subr.bf16.mxu0 %v3580_v14 }
 0x623   :  { %v641_v5 = vpop.permute.xlu1 %640 }
 0x624   :  { %v646_v11 = vsel %vm201_vm2, %v641_v5, 0 }
 0x627   :  { %v691_v10 = vpop.permute.xlu1 %690 }
 0x628   :  { %v3493_v60 = vpop.eup %3492  ;;  %v696_v13 = vsel %vm201_vm2, %v691_v10, 0 }
 0x629   :  { %v530_v61 = vsel %vm201_vm2, %v3493_v60, 0.0 }
 0x62a   :  { %v3495_v62 = vpop.eup %3494  ;;  %531 = vadd.xlane.f32.xlu0 %v530_v61 }
 0x62b   :  { %v533_v63 = vsel %vm201_vm2, %v3495_v62, 0.0  ;;  %v689_v16 = vpop.permute.xlu1 %688 }
 0x62e   :  { %534 = vadd.xlane.f32.xlu0 %v533_v63 }
 0x644   :  { %542 = vrot.lane.b32.xlu0 %v3743_v39, %s3586_s0 }
 0x648   :  { %638 = vrot.lane.b32.xlu0 %v3743_v39, %s4343_s4 }
 0x6b7   :  { %v532_v0 = vpop.xlane.xlu0 %531 }
 0x6b8   :  { %3496 = vrcp.f32 %v532_v0 }
 0x6bb   :  { %v535_v1 = vpop.xlane.xlu0 %534 }
 0x6bc   :  { %3498 = vrcp.f32 %v535_v1 }
 0x6bf   :  { %v543_v2 = vpop.permute.xlu0 %542 }
 0x6c0   :  { %v548_v3 = vsel %vm326_vm3, %v543_v2, 0 }
 0x6c1   :  { %3175 = vmatpush3.bf16.msra.mxu1 %v548_v3 }
 0x6c2   :  { %v3497_v4 = vpop.eup %3496  ;;  %3186 = vmatprep.subr.bf16.mxu1 %v3580_v14 }
 0x6c3   :  { %v538_v6 = vmul.f32 %v3497_v4, %v3493_v60  ;;  %v639_v15 = vpop.permute.xlu0 %638 }
 0x6c5   :  { %v540_v7 = vpack.c.bf16 %v538_v6, %v538_v6 }
 0x6c6   :  { %v3499_v8 = vpop.eup %3498 }
 0x6c7   :  { %v539_v9 = vmul.f32 %v3499_v8, %v3495_v62  ;;  %3177 = vmatmul.mubr.msk.bf16.vlgmr.msra.gmra.mrb[12].mxu1 %vm201_vm2, %v540_v7 }
 0x6c8   :  { %3188 = vmatprep.mubr.msk.bf16.mxu1 %vm3581_vm1, %v3580_v14 }
 0x6c9   :  { %v541_v12 = vpack.c.bf16 %v539_v9, %v539_v9 }
 0x6ca   :  { %3187 = vmatpush3.bf16.xpose.msra.mxu1 %v646_v11 }
 0x6cb   :  { %3183 = vmatmul.mubr.msk.bf16.vlgmr.msra.gmra.mrb[16].mxu0 %vm201_vm2, %v541_v12  ;;  %3198 = vmatprep.subr.bf16.mxu1 %v3580_v14 }
 0x6cc   :  { %3193 = vmatpush3.bf16.xpose.msra.mxu0 %v696_v13  ;;  %3194 = vmatprep.mubr.msk.bf16.mxu0 %vm3581_vm1, %v3580_v14 }
 0x6cd   :  { %3204 = vmatprep.subr.bf16.mxu0 %v3580_v14 }
 0x6d1   :  { %3189 = vmatmul.mubr.msk.bf16.vlgmr.msra.gmra.mrb[16].mxu1 %vm201_vm2, %v639_v15 }
 0x6d2   :  { %3200 = vmatprep.mubr.msk.bf16.mxu1 %vm3581_vm1, %v3580_v14 }
 0x6d3   :  { %3195 = vmatmul.mubr.msk.bf16.vlgmr.msra.gmra.mrb[20].mxu0 %vm201_vm2, %v689_v16 }
 0x6d4   :  { %3206 = vmatprep.mubr.msk.bf16.mxu0 %vm3581_vm1, %v3580_v14 }
 0x79a   :  { %v3853_v17 = vpop.f32.mrb[12].mxu1 }
 0x79b   :  { %v3178_v18 = vpop.f32.mrb[13].mxu1 }
 0x79c   :  { %v587_v19 = vpop.f32.mrb[14].mxu1 }
 0x79d   :  { %v3179_v20 = vpop.f32.mrb[15].mxu1 }
 0x79e   :  { %v3855_v21 = vpop.f32.mrb[16].mxu0 }
 0x79f   :  { %v3426_v22 = vpack.i.bf16 %v3855_v21, %v3853_v17  ;;  %v3184_v23 = vpop.f32.mrb[17].mxu0 }
 0x7a0   :  { %v635_v24 = vpop.f32.mrb[18].mxu0 }
 0x7a1   :  { %v3185_v25 = vpop.f32.mrb[19].mxu0 }
 0x7a4   :  { %v682_v27 = vpop.f32.mrb[16].mxu1 }
 0x7a5   :  { %v683_v28 = vadd.f32 %v3766_v47, %v682_v27  ;;  %v3190_v30 = vpop.f32.mrb[17].mxu1 }
 0x7a6   :  { %v685_v33 = vpop.f32.mrb[18].mxu1  ;;  %v732_v34 = vpop.f32.mrb[20].mxu0 }
 0x7a7   :  { %v733_v35 = vadd.f32 %v3771_v49, %v732_v34  ;;  %v3191_v36 = vpop.f32.mrb[19].mxu1  ;;  %v3196_v37 = vpop.f32.mrb[21].mxu0  ;;  %v738_v38 = vsel %vm201_vm2, %v683_v28, -inf }
 0x7a8   :  { %739 = vmax.xlane.f32.xlu0 %v738_v38  ;;  %v735_v40 = vpop.f32.mrb[22].mxu0 }
 0x7a9   :  { %v3197_v41 = vpop.f32.mrb[23].mxu0  ;;  %v741_v43 = vsel %vm201_vm2, %v733_v35, -inf }
 0x7aa   :  { %742 = vmax.xlane.f32.xlu1 %v741_v43 }
 0x7bb   :  { %810 = vrot.lane.b32.xlu1 %v3745_v42, %s4341_s22 }
 0x7bf   :  { %860 = vrot.lane.b32.xlu1 %v3743_v39, %s4339_s23 }
 0x7c3   :  { %910 = vrot.lane.b32.xlu1 %v3745_v42, %s4339_s23  ;;  %s4364_s23 = smov 16  }
 0x7c7   :  { %908 = vrot.lane.b32.xlu1 %v3745_v42, %s4336_s25 }
 0x835   :  { %v740_v44 = vpop.xlane.xlu0 %739 }
 0x836   :  { %v744_v45 = vsub.f32 %v683_v28, %v740_v44 }
 0x837   :  { %v743_v46 = vpop.xlane.xlu1 %742 }
 0x838   :  { %v746_v48 = vmul.f32 1.442695, %v744_v45  ;;  %v745_v50 = vsub.f32 %v733_v35, %v743_v46 }
 0x83a   :  { %3500 = vpow2.f32 %v746_v48  ;;  %v748_v51 = vmul.f32 1.442695, %v745_v50 }
 0x83b   :  { %v811_v52 = vpop.permute.xlu1 %810 }
 0x83c   :  { %3502 = vpow2.f32 %v748_v51  ;;  %v816_v53 = vsel %vm326_vm3, %v811_v52, 0 }
 0x83d   :  { %3205 = vmatpush3.bf16.msra.mxu0 %v816_v53 }
 0x83e   :  { %3216 = vmatprep.subr.bf16.mxu0 %v3580_v14 }
 0x83f   :  { %v861_v63 = vpop.permute.xlu1 %860 }
 0x840   :  { %v866_v5 = vsel %vm201_vm2, %v861_v63, 0 }
 0x843   :  { %v911_v4 = vpop.permute.xlu1 %910 }
 0x844   :  { %v3501_v54 = vpop.eup %3500  ;;  %v916_v7 = vsel %vm201_vm2, %v911_v4, 0 }
 0x845   :  { %v750_v55 = vsel %vm201_vm2, %v3501_v54, 0.0 }
 0x846   :  { %v3503_v56 = vpop.eup %3502  ;;  %751 = vadd.xlane.f32.xlu0 %v750_v55 }
 0x847   :  { %v753_v57 = vsel %vm201_vm2, %v3503_v56, 0.0  ;;  %v909_v9 = vpop.permute.xlu1 %908 }
 0x84a   :  { %754 = vadd.xlane.f32.xlu0 %v753_v57 }
 0x860   :  { %762 = vrot.lane.b32.xlu0 %v3743_v39, %s4341_s22  ;;  %s4363_s22 = smov 8  }
 0x864   :  { %858 = vrot.lane.b32.xlu0 %v3743_v39, %s4336_s25 }
 0x8d3   :  { %v752_v58 = vpop.xlane.xlu0 %751 }
 0x8d4   :  { %3504 = vrcp.f32 %v752_v58  ;;  %v3458_v58 = vld [vmem:[%s4314_s6] sm:$0xff]  }
 0x8d7   :  { %v755_v59 = vpop.xlane.xlu0 %754 }
 0x8d8   :  { %3506 = vrcp.f32 %v755_v59  ;;  %v3459_v59 = vld [vmem:[%s4314_s6 + $0x8] sm:$0xff]  }
 0x8db   :  { %v763_v60 = vpop.permute.xlu0 %762 }
 0x8dc   :  { %v768_v61 = vsel %vm326_vm3, %v763_v60, 0 }
 0x8dd   :  { %3199 = vmatpush3.bf16.msra.mxu1 %v768_v61 }
 0x8de   :  { %v3505_v62 = vpop.eup %3504  ;;  %3210 = vmatprep.subr.bf16.mxu1 %v3580_v14 }
 0x8df   :  { %v758_v0 = vmul.f32 %v3505_v62, %v3501_v54  ;;  %v859_v8 = vpop.permute.xlu0 %858 }
 0x8e1   :  { %v760_v1 = vpack.c.bf16 %v758_v0, %v758_v0 }
 0x8e2   :  { %v3507_v2 = vpop.eup %3506 }
 0x8e3   :  { %v759_v3 = vmul.f32 %v3507_v2, %v3503_v56  ;;  %3201 = vmatmul.mubr.msk.bf16.vlgmr.msra.gmra.mrb[20].mxu1 %vm201_vm2, %v760_v1 }
 0x8e4   :  { %3212 = vmatprep.mubr.msk.bf16.mxu1 %vm3581_vm1, %v3580_v14 }
 0x8e5   :  { %v761_v6 = vpack.c.bf16 %v759_v3, %v759_v3 }
 0x8e6   :  { %3211 = vmatpush3.bf16.xpose.msra.mxu1 %v866_v5 }
 0x8e7   :  { %3207 = vmatmul.mubr.msk.bf16.vlgmr.msra.gmra.mrb[24].mxu0 %vm201_vm2, %v761_v6  ;;  %3222 = vmatprep.subr.bf16.mxu1 %v3580_v14 }
 0x8e8   :  { %3217 = vmatpush3.bf16.xpose.msra.mxu0 %v916_v7  ;;  %3218 = vmatprep.mubr.msk.bf16.mxu0 %vm3581_vm1, %v3580_v14 }
 0x8e9   :  { %3228 = vmatprep.subr.bf16.mxu0 %v3580_v14 }
 0x8ed   :  { %3213 = vmatmul.mubr.msk.bf16.vlgmr.msra.gmra.mrb[24].mxu1 %vm201_vm2, %v859_v8 }
 0x8ee   :  { %3224 = vmatprep.mubr.msk.bf16.mxu1 %vm3581_vm1, %v3580_v14 }
 0x8ef   :  { %3219 = vmatmul.mubr.msk.bf16.vlgmr.msra.gmra.mrb[28].mxu0 %vm201_vm2, %v909_v9 }
 0x8f0   :  { %3230 = vmatprep.mubr.msk.bf16.mxu0 %vm3581_vm1, %v3580_v14 }
 0x9b6   :  { %v804_v10 = vpop.f32.mrb[20].mxu1 }
 0x9b7   :  { %v3202_v11 = vpop.f32.mrb[21].mxu1 }
 0x9b8   :  { %v807_v12 = vpop.f32.mrb[22].mxu1 }
 0x9b9   :  { %v3203_v13 = vpop.f32.mrb[23].mxu1 }
 0x9ba   :  { %v852_v15 = vpop.f32.mrb[24].mxu0 }
 0x9bb   :  { %v3431_v16 = vpack.i.bf16 %v852_v15, %v804_v10  ;;  %v3208_v18 = vpop.f32.mrb[25].mxu0 }
 0x9bc   :  { %v855_v19 = vpop.f32.mrb[26].mxu0 }
 0x9bd   :  { %v3209_v20 = vpop.f32.mrb[27].mxu0 }
 0x9c0   :  { %v902_v23 = vpop.f32.mrb[24].mxu1 }
 0x9c1   :  { %v903_v24 = vadd.f32 %v3766_v47, %v902_v23  ;;  %v3214_v25 = vpop.f32.mrb[25].mxu1 }
 0x9c2   :  { %v905_v27 = vpop.f32.mrb[26].mxu1  ;;  %v952_v28 = vpop.f32.mrb[28].mxu0 }
 0x9c3   :  { %v953_v30 = vadd.f32 %v3771_v49, %v952_v28  ;;  %v3215_v33 = vpop.f32.mrb[27].mxu1  ;;  %v3220_v34 = vpop.f32.mrb[29].mxu0  ;;  %v958_v35 = vsel %vm201_vm2, %v903_v24, -inf }
 0x9c4   :  { %959 = vmax.xlane.f32.xlu0 %v958_v35  ;;  %v955_v36 = vpop.f32.mrb[30].mxu0 }
 0x9c5   :  { %v3221_v37 = vpop.f32.mrb[31].mxu0  ;;  %v961_v38 = vsel %vm201_vm2, %v953_v30, -inf }
 0x9c6   :  { %962 = vmax.xlane.f32.xlu1 %v961_v38 }
 0x9d7   :  { %1030 = vrot.lane.b32.xlu1 %v3745_v42, %s4334_s3 }
 0x9db   :  { %3427 = vrot.lane.b32.xlu1 %v3426_v22, %s4333_s27  ;;  %s4338_s27 = smov 24  }
 0x9df   :  { %3432 = vrot.lane.b32.xlu1 %v3431_v16, %s4332_s28 }
 0xa51   :  { %v960_v47 = vpop.xlane.xlu0 %959 }
 0xa52   :  { %v964_v49 = vsub.f32 %v903_v24, %v960_v47 }
 0xa53   :  { %v963_v40 = vpop.xlane.xlu1 %962 }
 0xa54   :  { %v966_v41 = vmul.f32 1.442695, %v964_v49  ;;  %v965_v43 = vsub.f32 %v953_v30, %v963_v40 }
 0xa56   :  { %3508 = vpow2.f32 %v966_v41  ;;  %v968_v44 = vmul.f32 1.442695, %v965_v43 }
 0xa57   :  { %v1031_v45 = vpop.permute.xlu1 %1030 }
 0xa58   :  { %3510 = vpow2.f32 %v968_v44  ;;  %v1036_v42 = vsel %vm326_vm3, %v1031_v45, 0 }
 0xa59   :  { %3229 = vmatpush3.bf16.msra.mxu0 %v1036_v42 }
 0xa5a   :  { %3242 = vmatprep.subr.bf16.mxu0 %v3580_v14 }
 0xa5b   :  { %v3428_v5 = vpop.permute.xlu1 %3427 }
 0xa5c   :  { %v3430_v7 = vunpack.i.h.bf16 %v3428_v5  ;;  %v3429_v8 = vunpack.i.l.bf16 %v3428_v5 }
 0xa5e   :  { %v1103_v12 = vsel %vm201_vm2, %v3813_v29, %v3430_v7  ;;  %v1102_v13 = vsel %vm201_vm2, %v3811_v26, %v3429_v8  ;;  %v2940_v26 = vld [vmem:[%s4315_s7] ss:$0 sm:$0xff] }
 0xa5f   :  { %v3433_v6 = vpop.permute.xlu1 %3432 }
 0xa60   :  { %v3509_v46 = vpop.eup %3508  ;;  %v3435_v9 = vunpack.i.h.bf16 %v3433_v6  ;;  %v3434_v10 = vunpack.i.l.bf16 %v3433_v6 }
 0xa61   :  { %v970_v17 = vsel %vm201_vm2, %v3509_v46, 0.0 }
 0xa62   :  { %v3511_v21 = vpop.eup %3510  ;;  %971 = vadd.xlane.f32.xlu0 %v970_v17  ;;  %v1105_v18 = vsel %vm1104_vm4, %v1102_v13, %v3434_v10  ;;  %v1106_v19 = vsel %vm1104_vm4, %v1103_v12, %v3435_v9 }
 0xa63   :  { %v973_v22 = vsel %vm201_vm2, %v3511_v21, 0.0 }
 0xa66   :  { %974 = vadd.xlane.f32.xlu0 %v973_v22 }
 0xa7c   :  { %982 = vrot.lane.b32.xlu0 %v3743_v39, %s4334_s3  ;;  %s4362_s3 = smov 40  }
 0xaef   :  { %v972_v48 = vpop.xlane.xlu0 %971 }
 0xaf0   :  { %3512 = vrcp.f32 %v972_v48 }
 0xaf3   :  { %v975_v50 = vpop.xlane.xlu0 %974 }
 0xaf4   :  { %3514 = vrcp.f32 %v975_v50 }
 0xaf7   :  { %v983_v51 = vpop.permute.xlu0 %982 }
 0xaf8   :  { %v988_v52 = vsel %vm326_vm3, %v983_v51, 0 }
 0xaf9   :  { %3223 = vmatpush3.bf16.msra.mxu1 %v988_v52 }
 0xafa   :  { %v3513_v53 = vpop.eup %3512  ;;  %3234 = vmatprep.subr.bf16.mxu1 %v3580_v14 }
 0xafb   :  { %v978_v54 = vmul.f32 %v3513_v53, %v3509_v46  ;;  %v3461_v46 = vld [vmem:[%s4316_s10 + $0x8] sm:$0xff]  }
 0xafd   :  { %v980_v55 = vpack.c.bf16 %v978_v54, %v978_v54  ;;  %v2944_v54 = vld [vmem:[%s4317_s8] ss:$0 sm:$0xff] }
 0xafe   :  { %v3515_v56 = vpop.eup %3514 }
 0xaff   :  { %v979_v57 = vmul.f32 %v3515_v56, %v3511_v21  ;;  %3225 = vmatmul.mubr.msk.bf16.vlgmr.msra.gmra.mrb[28].mxu1 %vm201_vm2, %v980_v55 }
 0xb00   :  { %3238 = vmatprep.mubr.msk.bf16.mxu1 %vm3581_vm1, %v3580_v14  ;;  %3235 = vmatpush3.bf16.msra.mxu1 %v3458_v58 }
 0xb01   :  { %v981_v39 = vpack.c.bf16 %v979_v57, %v979_v57  ;;  %3236 = vmatprep.subr.bf16.mxu1 %v3580_v14 }
 0xb03   :  { %3231 = vmatmul.mubr.msk.bf16.vlgmr.msra.gmra.mrb[32].mxu0 %vm201_vm2, %v981_v39  ;;  %v2945_v39 = vld [vmem:[%s4318_s9] ss:$0 sm:$0xff] }
 0xb04   :  { %3246 = vmatprep.mubr.msk.bf16.mxu0 %vm3581_vm1, %v3580_v14  ;;  %3237 = vmatpush3.bf16.msra.mxu1 %v3459_v59 }
 0xb05   :  { %3250 = vmatprep.subr.bf16.mxu1 %v3580_v14 }
 0xbd2   :  { %v1024_v60 = vpop.f32.mrb[28].mxu1 }
 0xbd3   :  { %v3226_v61 = vpop.f32.mrb[29].mxu1 }
 0xbd4   :  { %v1027_v62 = vpop.f32.mrb[30].mxu1 }
 0xbd5   :  { %v3227_v63 = vpop.f32.mrb[31].mxu1  ;;  %v3462_v62 = vld [vmem:[%s4319_s12] sm:$0xff]  }
 0xbd6   :  { %v1072_v0 = vpop.f32.mrb[32].mxu0  ;;  %v3463_v63 = vld [vmem:[%s4319_s12 + $0x8] sm:$0xff]  }
 0xbd7   :  { %v3436_v1 = vpack.i.bf16 %v1072_v0, %v1024_v60  ;;  %v3232_v2 = vpop.f32.mrb[33].mxu0  ;;  %v3464_v0 = vld [vmem:[%s4319_s12 + $0x10] sm:$0xff]  }
 0xbd8   :  { %v1075_v3 = vpop.f32.mrb[34].mxu0  ;;  %v2946_v2 = vld [vmem:[%s4320_s11] ss:$0 sm:$0xff] }
 0xbd9   :  { %3437 = vrot.lane.b32.xlu0 %v3436_v1, %s4338_s27  ;;  %v3233_v4 = vpop.f32.mrb[35].mxu0  ;;  %v3465_v1 = vld [vmem:[%s4319_s12 + $0x18] sm:$0xff]  }
 0xc4b   :  { %v3438_v11 = vpop.permute.xlu0 %3437 }
 0xc4c   :  { %v3440_v15 = vunpack.i.h.bf16 %v3438_v11  ;;  %v3439_v16 = vunpack.i.l.bf16 %v3438_v11 }
 0xc4e   :  { %v1109_v20 = vsel %vm1107_vm5, %v1106_v19, %v3440_v15  ;;  %v1108_v23 = vsel %vm1107_vm5, %v1105_v18, %v3439_v16 }
 0xc4f   :  { %v1110_v24 = vpack.c.bf16 %v1109_v20, %v1108_v23 }
 0xc51   :  { %3239 = vmatmul.mubr.msk.bf16.vlgmr.msra.gmra.mrb[32].mxu1 %vm70_vm0, %v1110_v24 }
 0xc52   :  { %3258 = vmatprep.mubr.msk.bf16.mxu1 %vm3581_vm1, %v3580_v14  ;;  %3251 = vmatpush3.bf16.msra.mxu1 %v3462_v62 }
 0xc53   :  { %3252 = vmatprep.subr.bf16.mxu1 %v3580_v14 }
 0xc56   :  { %3253 = vmatpush3.bf16.msra.mxu1 %v3463_v63 }
 0xc57   :  { %3254 = vmatprep.subr.bf16.mxu1 %v3580_v14 }
 0xc5a   :  { %3255 = vmatpush3.bf16.msra.mxu1 %v3464_v0  ;;  %v2957_v0 = vld [vmem:[%s4323_s15] ss:$0 sm:$0xff] }
 0xc5b   :  { %3256 = vmatprep.subr.bf16.mxu1 %v3580_v14 }
 0xc5e   :  { %3257 = vmatpush3.bf16.msra.mxu1 %v3465_v1 }
 0xc5f   :  { %3276 = vmatprep.subr.bf16.mxu1 %v3580_v14 }
 0xd24   :  { %v1171_v29 = vpop.f32.mrb[32].mxu1 }
 0xd25   :  { %v1172_v25 = vadd.f32 %v2940_v26, %v1171_v29  ;;  %v3240_v27 = vpop.f32.mrb[33].mxu1 }
 0xd26   :  { %v1174_v28 = vpop.f32.mrb[34].mxu1 }
 0xd27   :  { %v1175_v30 = vadd.f32 %v2940_v26, %v1174_v28  ;;  %v3241_v33 = vpop.f32.mrb[35].mxu1  ;;  %v1178_v34 = vadd.f32 %v1172_v25, %v3731_v31 }
 0xd29   :  { %v1182_v35 = vsel %vm70_vm0, %v1178_v34, 0.0  ;;  %v1179_v36 = vadd.f32 %v1175_v30, %v3733_v32  ;;  %v3460_v32 = vld [vmem:[%s4316_s10] sm:$0xff]  }
 0xd2a   :  { %1183 = vadd.xlane.f32.xlu1 %v1182_v35  ;;  %3243 = vmatpush3.bf16.msra.mxu0 %v3460_v32 }
 0xd2b   :  { %v1185_v37 = vsel %vm70_vm0, %v1179_v36, 0.0  ;;  %3244 = vmatprep.subr.bf16.mxu0 %v3580_v14 }
 0xd2c   :  { %1186 = vadd.xlane.f32.xlu0 %v1185_v37 }
 0xd2e   :  { %3245 = vmatpush3.bf16.msra.mxu0 %v3461_v46 }
 0xd2f   :  { %3262 = vmatprep.subr.bf16.mxu0 %v3580_v14 }
 0xdb7   :  { %v1184_v38 = vpop.xlane.xlu1 %1183 }
 0xdb8   :  { %v1188_v47 = vmul.f32 0.03125, %v1184_v38 }
 0xdb9   :  { %v1187_v49 = vpop.xlane.xlu0 %1186 }
 0xdba   :  { %v1190_v40 = vsub.f32 %v1178_v34, %v1188_v47  ;;  %v1189_v41 = vmul.f32 0.03125, %v1187_v49  ;;  %v2950_v34 = vld [vmem:[%s4321_s13] ss:$0 sm:$0xff] }
 0xdbc   :  { %v1191_v43 = vsub.f32 %v1179_v36, %v1189_v41  ;;  %v1192_v44 = vmul.f32 %v1190_v40, %v1190_v40 }
 0xdbe   :  { %v1194_v45 = vsel %vm70_vm0, %v1192_v44, 0.0  ;;  %v1193_v42 = vmul.f32 %v1191_v43, %v1191_v43 }
 0xdbf   :  { %1195 = vadd.xlane.f32.xlu0 %v1194_v45 }
 0xdc0   :  { %v1197_v31 = vsel %vm70_vm0, %v1193_v42, 0.0 }
 0xdc3   :  { %1198 = vadd.xlane.f32.xlu0 %v1197_v31 }
 0xe4c   :  { %v1196_v17 = vpop.xlane.xlu0 %1195 }
 0xe4d   :  { %v1200_v21 = vmul.f32 0.03125, %v1196_v17 }
 0xe4f   :  { %v1202_v22 = vadd.f32 1e-12, %v1200_v21 }
 0xe50   :  { %v1199_v48 = vpop.xlane.xlu0 %1198 }
 0xe51   :  { %3516 = vrsqrt.f32 %v1202_v22  ;;  %v1201_v50 = vmul.f32 0.03125, %v1199_v48 }
 0xe53   :  { %v1203_v51 = vadd.f32 1e-12, %v1201_v50 }
 0xe55   :  { %3518 = vrsqrt.f32 %v1203_v51  ;;  %v3466_v51 = vld [vmem:[%s4353_s26 + $0x10] sm:$0xff]  }
 0xe5b   :  { %v3517_v52 = vpop.eup %3516 }
 0xe5c   :  { %v1206_v53 = vmul.f32 %v3517_v52, %v1190_v40  ;;  %v3467_v52 = vld [vmem:[%s4353_s26 + $0x18] sm:$0xff]  }
 0xe5e   :  { %v1214_v56 = vmul.f32 %v2944_v54, %v1206_v53 }
 0xe5f   :  { %v3519_v55 = vpop.eup %3518 }
 0xe60   :  { %v1207_v57 = vmul.f32 %v3519_v55, %v1191_v43  ;;  %v1222_v59 = vadd.f32 %v2945_v39, %v1214_v56 }
 0xe62   :  { %v1215_v58 = vmul.f32 %v2944_v54, %v1207_v57 }
 0xe64   :  { %v1223_v60 = vadd.f32 %v2945_v39, %v1215_v58 }
 0xe66   :  { %v1224_v61 = vpack.c.bf16 %v1223_v60, %v1222_v59 }
 0xe68   :  { %3247 = vmatmul.mubr.msk.bf16.vlgmr.msra.gmra.mrb[36].mxu0 %vm70_vm0, %v1224_v61 }
 0xe69   :  { %3266 = vmatprep.mubr.msk.bf16.mxu0 %vm3581_vm1, %v3580_v14  ;;  %3263 = vmatpush3.bf16.msra.mxu0 %v3466_v51 }
 0xe6a   :  { %3264 = vmatprep.subr.bf16.mxu0 %v3580_v14 }
 0xe6d   :  { %3265 = vmatpush3.bf16.msra.mxu0 %v3467_v52 }
 0xe6e   :  { %3270 = vmatprep.subr.bf16.mxu0 %v3580_v14 }
 0xf3b   :  { %v1285_v3 = vpop.f32.mrb[36].mxu0 }
 0xf3c   :  { %v1286_v4 = vadd.f32 %v2946_v2, %v1285_v3  ;;  %v3248_v5 = vpop.f32.mrb[37].mxu0 }
 0xf3d   :  { %v1288_v6 = vpop.f32.mrb[38].mxu0  ;;  %v2963_v5 = vld [vmem:[%s4356_s24 + $0x1] ss:$0 sm:$0xff]  ;;  %s4365_s24 = smov 24  }
 0xf3e   :  { %v1294_v7 = vmul.f32 0.044715, %v1286_v4  ;;  %v1289_v8 = vadd.f32 %v2946_v2, %v1288_v6  ;;  %v3249_v9 = vpop.f32.mrb[39].mxu0  ;;  %v1292_v29 = vmul.f32 0.5, %v1286_v4 }
 0xf40   :  { %v1296_v10 = vmul.f32 %v1294_v7, %v1286_v4  ;;  %v1295_v11 = vmul.f32 0.044715, %v1289_v8  ;;  %v1293_v25 = vmul.f32 0.5, %v1289_v8 }
 0xf42   :  { %v1298_v12 = vmul.f32 %v1296_v10, %v1286_v4  ;;  %v1297_v13 = vmul.f32 %v1295_v11, %v1289_v8 }
 0xf44   :  { %v1300_v15 = vadd.f32 %v1298_v12, %v1286_v4  ;;  %v1299_v16 = vmul.f32 %v1297_v13, %v1289_v8 }
 0xf46   :  { %v1302_v18 = vmul.f32 0.7978846, %v1300_v15  ;;  %v1301_v19 = vadd.f32 %v1299_v16, %v1289_v8 }
 0xf48   :  { %3520 = vtanh.f32 %v1302_v18  ;;  %v1303_v20 = vmul.f32 0.7978846, %v1301_v19 }
 0xf4a   :  { %3522 = vtanh.f32 %v1303_v20 }
 0xf52   :  { %v3521_v23 = vpop.eup %3520 }
 0xf53   :  { %v1306_v24 = vadd.f32 1.0, %v3521_v23  ;;  %v4046_v23 = vld [vmem:[%s4313_s1] ss:$0 sm:$0xff] }
 0xf54   :  { %v3523_v26 = vpop.eup %3522 }
 0xf55   :  { %v1307_v27 = vadd.f32 1.0, %v3523_v26  ;;  %v1308_v28 = vmul.f32 %v1306_v24, %v1292_v29 }
 0xf57   :  { %v1309_v30 = vmul.f32 %v1307_v27, %v1293_v25  ;;  %v4052_v27 = vld [vmem:[%s4313_s1 + $0x1] ss:$0 sm:$0xff]  ;;  %s4357_s1 = smov 80  }
 0xf59   :  { %v1310_v33 = vpack.c.bf16 %v1309_v30, %v1308_v28 }
 0xf5b   :  { %3259 = vmatmul.mubr.msk.bf16.vlgmr.msra.gmra.mrb[36].mxu1 %vm1350_vm6, %v1310_v33 }
 0xf5c   :  { %3278 = vmatprep.mubr.msk.bf16.mxu1 %vm3581_vm1, %v3580_v14 }
0x102e   :  { %v1388_v35 = vpop.f32.mrb[36].mxu1 }
0x102f   :  { %v1389_v36 = vadd.f32 %v2950_v34, %v1388_v35  ;;  %v3260_v37 = vpop.f32.mrb[37].mxu1 }
0x1030   :  { %v1391_v38 = vpop.f32.mrb[38].mxu1 }
0x1031   :  { %v1392_v47 = vadd.f32 %v2950_v34, %v1391_v38  ;;  %v3261_v49 = vpop.f32.mrb[39].mxu1  ;;  %v1395_v40 = vadd.f32 %v1389_v36, %v1222_v59  ;;  %v2956_v59 = vld [vmem:[%s4322_s14] ss:$0 sm:$0xff] }
0x1033   :  { %v1399_v41 = vsel %vm70_vm0, %v1395_v40, 0.0  ;;  %v1396_v43 = vadd.f32 %v1392_v47, %v1223_v60 }
0x1034   :  { %1400 = vadd.xlane.f32.xlu1 %v1399_v41 }
0x1035   :  { %v1402_v44 = vsel %vm70_vm0, %v1396_v43, 0.0 }
0x1036   :  { %1403 = vadd.xlane.f32.xlu0 %v1402_v44 }
0x10c1   :  { %v1401_v45 = vpop.xlane.xlu1 %1400 }
0x10c2   :  { %v1405_v42 = vmul.f32 0.03125, %v1401_v45 }
0x10c3   :  { %v1404_v31 = vpop.xlane.xlu0 %1403 }
0x10c4   :  { %v1407_v32 = vsub.f32 %v1395_v40, %v1405_v42  ;;  %v1406_v46 = vmul.f32 0.03125, %v1404_v31 }
0x10c6   :  { %v1408_v17 = vsub.f32 %v1396_v43, %v1406_v46  ;;  %v1409_v21 = vmul.f32 %v1407_v32, %v1407_v32 }
0x10c8   :  { %v1411_v22 = vsel %vm70_vm0, %v1409_v21, 0.0  ;;  %v1410_v48 = vmul.f32 %v1408_v17, %v1408_v17 }
0x10c9   :  { %1412 = vadd.xlane.f32.xlu1 %v1411_v22 }
0x10ca   :  { %v1414_v50 = vsel %vm70_vm0, %v1410_v48, 0.0 }
0x10cb   :  { %1415 = vadd.xlane.f32.xlu0 %v1414_v50 }
0x1156   :  { %v1413_v53 = vpop.xlane.xlu1 %1412 }
0x1157   :  { %v1417_v54 = vmul.f32 0.03125, %v1413_v53 }
0x1158   :  { %v1416_v55 = vpop.xlane.xlu0 %1415 }
0x1159   :  { %v1419_v56 = vadd.f32 1e-12, %v1417_v54  ;;  %v1418_v57 = vmul.f32 0.03125, %v1416_v55 }
0x115b   :  { %3524 = vrsqrt.f32 %v1419_v56  ;;  %v1420_v39 = vadd.f32 1e-12, %v1418_v57 }
0x115d   :  { %3526 = vrsqrt.f32 %v1420_v39 }
0x1165   :  { %v3525_v58 = vpop.eup %3524 }
0x1166   :  { %v1423_v60 = vmul.f32 %v3525_v58, %v1407_v32 }
0x1167   :  { %v3527_v61 = vpop.eup %3526 }
0x1168   :  { %v1431_v62 = vmul.f32 %v2956_v59, %v1423_v60  ;;  %v1424_v63 = vmul.f32 %v3527_v61, %v1408_v17 }
0x116a   :  { %v1432_v1 = vmul.f32 %v2956_v59, %v1424_v63  ;;  %v4011_v2 = vadd.f32 %v2957_v0, %v1431_v62 }
0x116c   :  { %v4013_v3 = vadd.f32 %v2957_v0, %v1432_v1 }
0x116e   :  { %v1441_v4 = vpack.c.bf16 %v4013_v3, %v4011_v2 }
0x1170   :  { %3267 = vmatmul.mubr.msk.bf16.vlgmr.msra.gmra.mrb[40].mxu0 %vm70_vm0, %v1441_v4 }
0x1171   :  { %3272 = vmatprep.mubr.msk.bf16.mxu0 %vm3581_vm1, %v3580_v14 }
0x1243   :  { %v1504_v6 = vpop.f32.mrb[40].mxu0 }
0x1244   :  { %v1505_v7 = vadd.f32 %v2963_v5, %v1504_v6  ;;  %v3268_v8 = vpop.f32.mrb[41].mxu0 }
0x1245   :  { %v1507_v9 = vpop.f32.mrb[42].mxu0 }
0x1246   :  { %v4023_v10 = vpack.c.bf16 %v1505_v7, %v1505_v7  ;;  %v1508_v11 = vadd.f32 %v2963_v5, %v1507_v9  ;;  %v3269_v12 = vpop.f32.mrb[43].mxu0 }
0x1248   :  { %v4025_v13 = vpack.c.bf16 %v1508_v11, %v1508_v11  ;;  %1514 = vrot.lane.b32.xlu1 %v4023_v10, %s3582_s2 }
0x124a   :  { %1563 = vrot.lane.b32.xlu0 %v4025_v13, %s3582_s2 }
0x12ba   :  { %v1515_v15 = vpop.permute.xlu1 %1514 }
0x12bb   :  { %v1520_v16 = vsel %vm201_vm2, %v1515_v15, 0 }
0x12bc   :  { %3271 = vmatpush3.bf16.xpose.msra.mxu0 %v1520_v16  ;;  %v1564_v18 = vpop.permute.xlu0 %1563 }
0x12bd   :  { %v1569_v19 = vsel %vm201_vm2, %v1564_v18, 0  ;;  %3282 = vmatprep.subr.bf16.mxu0 %v3580_v14 }
0x12be   :  { %3277 = vmatpush3.bf16.xpose.msra.mxu1 %v1569_v19 }
0x12bf   :  { %3288 = vmatprep.subr.bf16.mxu1 %v3580_v14 }
0x12c3   :  { %3273 = vmatmul.mubr.msk.bf16.vlgmr.msra.gmra.mrb[44].mxu0 %vm201_vm2, %v4023_v10 }
0x12c4   :  { %3284 = vmatprep.mubr.msk.bf16.mxu0 %vm3581_vm1, %v3580_v14 }
0x12c5   :  { %3279 = vmatmul.mubr.msk.bf16.vlgmr.msra.gmra.mrb[40].mxu1 %vm201_vm2, %v4025_v13 }
0x12c6   :  { %3290 = vmatprep.mubr.msk.bf16.mxu1 %vm3581_vm1, %v3580_v14 }
0x1396   :  { %v1556_v20 = vpop.f32.mrb[44].mxu0 }
0x1397   :  { %v1557_v24 = vadd.f32 %v4046_v23, %v1556_v20  ;;  %v3274_v26 = vpop.f32.mrb[45].mxu0 }
0x1398   :  { %v1559_v29 = vpop.f32.mrb[46].mxu0  ;;  %v1605_v25 = vpop.f32.mrb[40].mxu1 }
0x1399   :  { %v1606_v28 = vadd.f32 %v4052_v27, %v1605_v25  ;;  %v3275_v30 = vpop.f32.mrb[47].mxu0  ;;  %v3280_v33 = vpop.f32.mrb[41].mxu1  ;;  %v1611_v34 = vsel %vm201_vm2, %v1557_v24, -inf }
0x139a   :  { %v1608_v35 = vpop.f32.mrb[42].mxu1  ;;  %1612 = vmax.xlane.f32.xlu1 %v1611_v34 }
0x139b   :  { %v3281_v36 = vpop.f32.mrb[43].mxu1  ;;  %v1614_v37 = vsel %vm201_vm2, %v1606_v28, -inf }
0x139c   :  { %1615 = vmax.xlane.f32.xlu0 %v1614_v37 }
0x13ab   :  { %1635 = vrot.lane.b32.xlu1 %v4023_v10, %s3583_s5 }
0x1427   :  { %v1613_v38 = vpop.xlane.xlu1 %1612 }
0x1428   :  { %v1617_v47 = vsub.f32 %v1557_v24, %v1613_v38 }
0x1429   :  { %v1616_v49 = vpop.xlane.xlu0 %1615 }
0x142a   :  { %v1619_v40 = vmul.f32 1.442695, %v1617_v47  ;;  %v1618_v41 = vsub.f32 %v1606_v28, %v1616_v49 }
0x142b   :  { %v1636_v43 = vpop.permute.xlu1 %1635 }
0x142c   :  { %3528 = vpow2.f32 %v1619_v40  ;;  %v1621_v44 = vmul.f32 1.442695, %v1618_v41  ;;  %v1641_v45 = vsel %vm326_vm3, %v1636_v43, 0 }
0x142d   :  { %3283 = vmatpush3.bf16.msra.mxu0 %v1641_v45 }
0x142e   :  { %3530 = vpow2.f32 %v1621_v44  ;;  %3294 = vmatprep.subr.bf16.mxu0 %v3580_v14 }
0x1436   :  { %v3529_v42 = vpop.eup %3528 }
0x1437   :  { %v1623_v31 = vsel %vm201_vm2, %v3529_v42, 0.0 }
0x1438   :  { %v3531_v32 = vpop.eup %3530  ;;  %1624 = vadd.xlane.f32.xlu1 %v1623_v31 }
0x1439   :  { %v1626_v46 = vsel %vm201_vm2, %v3531_v32, 0.0 }
0x143a   :  { %1627 = vadd.xlane.f32.xlu0 %v1626_v46 }
0x1449   :  { %1733 = vrot.lane.b32.xlu1 %v4023_v10, %s3584_s29 }
0x144d   :  { %1783 = vrot.lane.b32.xlu1 %v4025_v13, %s3584_s29  ;;  %s4359_s29 = smov 48  }
0x1450   :  { %1683 = vrot.lane.b32.xlu0 %v4025_v13, %s3583_s5  ;;  %s4358_s5 = smov 112  }
0x1451   :  { %1731 = vrot.lane.b32.xlu1 %v4023_v10, %s3585_s30 }
0x1454   :  { %1781 = vrot.lane.b32.xlu0 %v4025_v13, %s3585_s30  ;;  %s4360_s30 = smov 72  }
0x14c5   :  { %v1625_v17 = vpop.xlane.xlu1 %1624 }
0x14c6   :  { %3532 = vrcp.f32 %v1625_v17 }
0x14c7   :  { %v1628_v21 = vpop.xlane.xlu0 %1627 }
0x14c8   :  { %3534 = vrcp.f32 %v1628_v21 }
0x14c9   :  { %v1734_v50 = vpop.permute.xlu1 %1733 }
0x14ca   :  { %v1739_v57 = vsel %vm201_vm2, %v1734_v50, 0 }
0x14cb   :  { %v1684_v22 = vpop.permute.xlu0 %1683 }
0x14cc   :  { %v1689_v48 = vsel %vm326_vm3, %v1684_v22, 0 }
0x14cd   :  { %3289 = vmatpush3.bf16.msra.mxu1 %v1689_v48  ;;  %v1784_v56 = vpop.permute.xlu1 %1783 }
0x14ce   :  { %3300 = vmatprep.subr.bf16.mxu1 %v3580_v14  ;;  %v1789_v58 = vsel %vm201_vm2, %v1784_v56, 0 }
0x14cf   :  { %v1782_v60 = vpop.permute.xlu0 %1781 }
0x14d0   :  { %v3533_v51 = vpop.eup %3532 }
0x14d1   :  { %v1631_v52 = vmul.f32 %v3533_v51, %v3529_v42  ;;  %v1732_v59 = vpop.permute.xlu1 %1731 }
0x14d2   :  { %v3535_v53 = vpop.eup %3534 }
0x14d3   :  { %v1632_v54 = vmul.f32 %v3535_v53, %v3531_v32  ;;  %v1633_v55 = vpack.c.bf16 %v1631_v52, %v1631_v52 }
0x14d5   :  { %3285 = vmatmul.mubr.msk.bf16.vlgmr.msra.gmra.mrb[48].mxu0 %vm201_vm2, %v1633_v55  ;;  %v1634_v39 = vpack.c.bf16 %v1632_v54, %v1632_v54 }
0x14d6   :  { %3295 = vmatpush3.bf16.xpose.msra.mxu0 %v1739_v57  ;;  %3296 = vmatprep.mubr.msk.bf16.mxu0 %vm3581_vm1, %v3580_v14 }
0x14d7   :  { %3291 = vmatmul.mubr.msk.bf16.vlgmr.msra.gmra.mrb[44].mxu1 %vm201_vm2, %v1634_v39  ;;  %3306 = vmatprep.subr.bf16.mxu0 %v3580_v14 }
0x14d8   :  { %3301 = vmatpush3.bf16.xpose.msra.mxu1 %v1789_v58  ;;  %3302 = vmatprep.mubr.msk.bf16.mxu1 %vm3581_vm1, %v3580_v14 }
0x14d9   :  { %3312 = vmatprep.subr.bf16.mxu1 %v3580_v14 }
0x14dd   :  { %3297 = vmatmul.mubr.msk.bf16.vlgmr.msra.gmra.mrb[52].mxu0 %vm201_vm2, %v1732_v59 }
0x14de   :  { %3308 = vmatprep.mubr.msk.bf16.mxu0 %vm3581_vm1, %v3580_v14 }
0x14df   :  { %3303 = vmatmul.mubr.msk.bf16.vlgmr.msra.gmra.mrb[48].mxu1 %vm201_vm2, %v1782_v60 }
0x14e0   :  { %3314 = vmatprep.mubr.msk.bf16.mxu1 %vm3581_vm1, %v3580_v14 }
0x15a8   :  { %v4091_v61 = vpop.f32.mrb[48].mxu0 }
0x15a9   :  { %v3286_v62 = vpop.f32.mrb[49].mxu0 }
0x15aa   :  { %v1680_v63 = vpop.f32.mrb[50].mxu0  ;;  %v4093_v0 = vpop.f32.mrb[44].mxu1 }
0x15ab   :  { %v3287_v1 = vpop.f32.mrb[51].mxu0  ;;  %v3292_v4 = vpop.f32.mrb[45].mxu1 }
0x15ac   :  { %v1728_v5 = vpop.f32.mrb[46].mxu1 }
0x15ad   :  { %v3293_v6 = vpop.f32.mrb[47].mxu1 }
0x15b0   :  { %v1775_v7 = vpop.f32.mrb[52].mxu0 }
0x15b1   :  { %v1776_v8 = vadd.f32 %v4046_v23, %v1775_v7  ;;  %v3298_v9 = vpop.f32.mrb[53].mxu0 }
0x15b2   :  { %v1778_v11 = vpop.f32.mrb[54].mxu0  ;;  %v1825_v12 = vpop.f32.mrb[48].mxu1 }
0x15b3   :  { %v1826_v15 = vadd.f32 %v4052_v27, %v1825_v12  ;;  %v3299_v16 = vpop.f32.mrb[55].mxu0  ;;  %v3304_v18 = vpop.f32.mrb[49].mxu1  ;;  %v1831_v19 = vsel %vm201_vm2, %v1776_v8, -inf }
0x15b4   :  { %v1828_v20 = vpop.f32.mrb[50].mxu1  ;;  %1832 = vmax.xlane.f32.xlu1 %v1831_v19 }
0x15b5   :  { %v3305_v24 = vpop.f32.mrb[51].mxu1  ;;  %v1834_v26 = vsel %vm201_vm2, %v1826_v15, -inf }
0x15b6   :  { %1835 = vmax.xlane.f32.xlu0 %v1834_v26 }
0x15c5   :  { %1855 = vrot.lane.b32.xlu1 %v4023_v10, %s3586_s0 }
0x15c9   :  { %1953 = vrot.lane.b32.xlu1 %v4023_v10, %s4357_s1 }
0x15cd   :  { %2003 = vrot.lane.b32.xlu1 %v4025_v13, %s4357_s1 }
0x15d1   :  { %1951 = vrot.lane.b32.xlu1 %v4023_v10, %s4358_s5 }
0x1641   :  { %v1833_v29 = vpop.xlane.xlu1 %1832 }
0x1642   :  { %v1837_v25 = vsub.f32 %v1776_v8, %v1833_v29 }
0x1643   :  { %v1836_v28 = vpop.xlane.xlu0 %1835 }
0x1644   :  { %v1839_v30 = vmul.f32 1.442695, %v1837_v25  ;;  %v1838_v33 = vsub.f32 %v1826_v15, %v1836_v28 }
0x1645   :  { %v1856_v34 = vpop.permute.xlu1 %1855 }
0x1646   :  { %3536 = vpow2.f32 %v1839_v30  ;;  %v1841_v35 = vmul.f32 1.442695, %v1838_v33  ;;  %v1861_v36 = vsel %vm326_vm3, %v1856_v34, 0 }
0x1647   :  { %3307 = vmatpush3.bf16.msra.mxu0 %v1861_v36 }
0x1648   :  { %3538 = vpow2.f32 %v1841_v35  ;;  %3318 = vmatprep.subr.bf16.mxu0 %v3580_v14 }
0x1649   :  { %v1954_v42 = vpop.permute.xlu1 %1953 }
0x164a   :  { %v1959_v17 = vsel %vm201_vm2, %v1954_v42, 0 }
0x164d   :  { %v2004_v22 = vpop.permute.xlu1 %2003 }
0x164e   :  { %v2009_v50 = vsel %vm201_vm2, %v2004_v22, 0 }
0x1650   :  { %v3537_v37 = vpop.eup %3536 }
0x1651   :  { %v1843_v38 = vsel %vm201_vm2, %v3537_v37, 0.0  ;;  %v1952_v51 = vpop.permute.xlu1 %1951 }
0x1652   :  { %v3539_v47 = vpop.eup %3538  ;;  %1844 = vadd.xlane.f32.xlu0 %v1843_v38 }
0x1653   :  { %v1846_v49 = vsel %vm201_vm2, %v3539_v47, 0.0 }
0x1656   :  { %1847 = vadd.xlane.f32.xlu0 %v1846_v49 }
0x166c   :  { %1903 = vrot.lane.b32.xlu0 %v4025_v13, %s3586_s0  ;;  %s4361_s0 = smov 104  }
0x1670   :  { %2001 = vrot.lane.b32.xlu0 %v4025_v13, %s4358_s5 }
0x16df   :  { %v1845_v40 = vpop.xlane.xlu0 %1844 }
0x16e0   :  { %3540 = vrcp.f32 %v1845_v40 }
0x16e3   :  { %v1848_v41 = vpop.xlane.xlu0 %1847 }
0x16e4   :  { %3542 = vrcp.f32 %v1848_v41 }
0x16e7   :  { %v1904_v43 = vpop.permute.xlu0 %1903 }
0x16e8   :  { %v1909_v44 = vsel %vm326_vm3, %v1904_v43, 0 }
0x16e9   :  { %3313 = vmatpush3.bf16.msra.mxu1 %v1909_v44 }
0x16ea   :  { %v3541_v45 = vpop.eup %3540  ;;  %3324 = vmatprep.subr.bf16.mxu1 %v3580_v14 }
0x16eb   :  { %v1851_v31 = vmul.f32 %v3541_v45, %v3537_v37  ;;  %v2002_v52 = vpop.permute.xlu0 %2001 }
0x16ed   :  { %v1853_v32 = vpack.c.bf16 %v1851_v31, %v1851_v31 }
0x16ee   :  { %v3543_v46 = vpop.eup %3542 }
0x16ef   :  { %v1852_v21 = vmul.f32 %v3543_v46, %v3539_v47  ;;  %3309 = vmatmul.mubr.msk.bf16.vlgmr.msra.gmra.mrb[56].mxu0 %vm201_vm2, %v1853_v32 }
0x16f0   :  { %3319 = vmatpush3.bf16.xpose.msra.mxu0 %v1959_v17  ;;  %3320 = vmatprep.mubr.msk.bf16.mxu0 %vm3581_vm1, %v3580_v14 }
0x16f1   :  { %v1854_v48 = vpack.c.bf16 %v1852_v21, %v1852_v21  ;;  %3330 = vmatprep.subr.bf16.mxu0 %v3580_v14 }
0x16f3   :  { %3315 = vmatmul.mubr.msk.bf16.vlgmr.msra.gmra.mrb[52].mxu1 %vm201_vm2, %v1854_v48 }
0x16f4   :  { %3325 = vmatpush3.bf16.xpose.msra.mxu1 %v2009_v50  ;;  %3326 = vmatprep.mubr.msk.bf16.mxu1 %vm3581_vm1, %v3580_v14 }
0x16f5   :  { %3336 = vmatprep.subr.bf16.mxu1 %v3580_v14 }
0x16f7   :  { %3321 = vmatmul.mubr.msk.bf16.vlgmr.msra.gmra.mrb[60].mxu0 %vm201_vm2, %v1952_v51 }
0x16f8   :  { %3332 = vmatprep.mubr.msk.bf16.mxu0 %vm3581_vm1, %v3580_v14 }
0x16fb   :  { %3327 = vmatmul.mubr.msk.bf16.vlgmr.msra.gmra.mrb[56].mxu1 %vm201_vm2, %v2002_v52 }
0x16fc   :  { %3338 = vmatprep.mubr.msk.bf16.mxu1 %vm3581_vm1, %v3580_v14 }
0x17c2   :  { %v4133_v53 = vpop.f32.mrb[56].mxu0 }
0x17c3   :  { %v3310_v54 = vpop.f32.mrb[57].mxu0 }
0x17c4   :  { %v1900_v55 = vpop.f32.mrb[58].mxu0 }
0x17c5   :  { %v3311_v56 = vpop.f32.mrb[59].mxu0 }
0x17c6   :  { %v4135_v57 = vpop.f32.mrb[52].mxu1 }
0x17c7   :  { %v3441_v39 = vpack.i.bf16 %v4135_v57, %v4133_v53  ;;  %v3316_v58 = vpop.f32.mrb[53].mxu1 }
0x17c8   :  { %v1948_v59 = vpop.f32.mrb[54].mxu1 }
0x17c9   :  { %v3317_v60 = vpop.f32.mrb[55].mxu1 }
0x17ca   :  { %v1995_v62 = vpop.f32.mrb[60].mxu0 }
0x17cb   :  { %v1996_v63 = vadd.f32 %v4046_v23, %v1995_v62  ;;  %v3322_v1 = vpop.f32.mrb[61].mxu0 }
0x17cc   :  { %v1998_v4 = vpop.f32.mrb[62].mxu0 }
0x17cd   :  { %v3323_v5 = vpop.f32.mrb[63].mxu0  ;;  %v2051_v6 = vsel %vm201_vm2, %v1996_v63, -inf }
0x17ce   :  { %v2045_v7 = vpop.f32.mrb[56].mxu1  ;;  %2052 = vmax.xlane.f32.xlu1 %v2051_v6 }
0x17cf   :  { %v2046_v8 = vadd.f32 %v4052_v27, %v2045_v7  ;;  %v3328_v9 = vpop.f32.mrb[57].mxu1 }
0x17d0   :  { %v2048_v11 = vpop.f32.mrb[58].mxu1 }
0x17d1   :  { %v3329_v12 = vpop.f32.mrb[59].mxu1  ;;  %v2054_v15 = vsel %vm201_vm2, %v2046_v8, -inf }
0x17d2   :  { %2055 = vmax.xlane.f32.xlu0 %v2054_v15 }
0x17df   :  { %2075 = vrot.lane.b32.xlu1 %v4023_v10, %s4359_s29 }
0x17e3   :  { %2173 = vrot.lane.b32.xlu1 %v4023_v10, %s4360_s30 }
0x17e7   :  { %2223 = vrot.lane.b32.xlu1 %v4025_v13, %s4360_s30 }
0x17eb   :  { %2171 = vrot.lane.b32.xlu1 %v4023_v10, %s4361_s0 }
0x185b   :  { %v2053_v16 = vpop.xlane.xlu1 %2052 }
0x185c   :  { %v2057_v18 = vsub.f32 %v1996_v63, %v2053_v16 }
0x185e   :  { %v2059_v19 = vmul.f32 1.442695, %v2057_v18 }
0x185f   :  { %v2056_v20 = vpop.xlane.xlu0 %2055  ;;  %v2076_v24 = vpop.permute.xlu1 %2075 }
0x1860   :  { %3544 = vpow2.f32 %v2059_v19  ;;  %v2058_v26 = vsub.f32 %v2046_v8, %v2056_v20  ;;  %v2081_v29 = vsel %vm326_vm3, %v2076_v24, 0 }
0x1861   :  { %3331 = vmatpush3.bf16.msra.mxu0 %v2081_v29 }
0x1862   :  { %v2061_v25 = vmul.f32 1.442695, %v2058_v26  ;;  %3342 = vmatprep.subr.bf16.mxu0 %v3580_v14 }
0x1863   :  { %v2174_v49 = vpop.permute.xlu1 %2173 }
0x1864   :  { %3546 = vpow2.f32 %v2061_v25  ;;  %v2179_v44 = vsel %vm201_vm2, %v2174_v49, 0 }
0x1867   :  { %v2224_v42 = vpop.permute.xlu1 %2223 }
0x1868   :  { %v2229_v32 = vsel %vm201_vm2, %v2224_v42, 0 }
0x186a   :  { %v3545_v28 = vpop.eup %3544 }
0x186b   :  { %v2063_v30 = vsel %vm201_vm2, %v3545_v28, 0.0  ;;  %v2172_v46 = vpop.permute.xlu1 %2171 }
0x186c   :  { %2064 = vadd.xlane.f32.xlu0 %v2063_v30 }
0x186e   :  { %v3547_v33 = vpop.eup %3546 }
0x186f   :  { %v2066_v34 = vsel %vm201_vm2, %v3547_v33, 0.0 }
0x1870   :  { %2067 = vadd.xlane.f32.xlu0 %v2066_v34 }
0x1886   :  { %2123 = vrot.lane.b32.xlu0 %v4025_v13, %s4359_s29 }
0x188a   :  { %2221 = vrot.lane.b32.xlu0 %v4025_v13, %s4361_s0 }
0x18f9   :  { %v2065_v35 = vpop.xlane.xlu0 %2064 }
0x18fa   :  { %3548 = vrcp.f32 %v2065_v35  ;;  %v3468_v35 = vld [vmem:[%s4314_s6 + $0x10] sm:$0xff]  }
0x18fd   :  { %v2068_v36 = vpop.xlane.xlu0 %2067 }
0x18fe   :  { %3550 = vrcp.f32 %v2068_v36  ;;  %v3469_v36 = vld [vmem:[%s4314_s6 + $0x18] sm:$0xff]  }
0x1901   :  { %v2124_v37 = vpop.permute.xlu0 %2123 }
0x1902   :  { %v2129_v38 = vsel %vm326_vm3, %v2124_v37, 0 }
0x1903   :  { %3337 = vmatpush3.bf16.msra.mxu1 %v2129_v38 }
0x1904   :  { %v3549_v47 = vpop.eup %3548  ;;  %3348 = vmatprep.subr.bf16.mxu1 %v3580_v14 }
0x1905   :  { %v2071_v40 = vmul.f32 %v3549_v47, %v3545_v28  ;;  %v2222_v17 = vpop.permute.xlu0 %2221 }
0x1907   :  { %v2073_v41 = vpack.c.bf16 %v2071_v40, %v2071_v40 }
0x1908   :  { %v3551_v43 = vpop.eup %3550 }
0x1909   :  { %v2072_v45 = vmul.f32 %v3551_v43, %v3547_v33  ;;  %3333 = vmatmul.mubr.msk.bf16.vlgmr.msra.gmra.mrb[64].mxu0 %vm201_vm2, %v2073_v41 }
0x190a   :  { %3343 = vmatpush3.bf16.xpose.msra.mxu0 %v2179_v44  ;;  %3344 = vmatprep.mubr.msk.bf16.mxu0 %vm3581_vm1, %v3580_v14 }
0x190b   :  { %v2074_v31 = vpack.c.bf16 %v2072_v45, %v2072_v45  ;;  %3354 = vmatprep.subr.bf16.mxu0 %v3580_v14 }
0x190d   :  { %3339 = vmatmul.mubr.msk.bf16.vlgmr.msra.gmra.mrb[60].mxu1 %vm201_vm2, %v2074_v31 }
0x190e   :  { %3349 = vmatpush3.bf16.xpose.msra.mxu1 %v2229_v32  ;;  %3350 = vmatprep.mubr.msk.bf16.mxu1 %vm3581_vm1, %v3580_v14 }
0x190f   :  { %3360 = vmatprep.subr.bf16.mxu1 %v3580_v14 }
0x1911   :  { %3345 = vmatmul.mubr.msk.bf16.vlgmr.msra.gmra.mrb[68].mxu0 %vm201_vm2, %v2172_v46 }
0x1912   :  { %3356 = vmatprep.mubr.msk.bf16.mxu0 %vm3581_vm1, %v3580_v14 }
0x1915   :  { %3351 = vmatmul.mubr.msk.bf16.vlgmr.msra.gmra.mrb[64].mxu1 %vm201_vm2, %v2222_v17 }
0x1916   :  { %3362 = vmatprep.mubr.msk.bf16.mxu1 %vm3581_vm1, %v3580_v14 }
0x19dc   :  { %v2117_v21 = vpop.f32.mrb[64].mxu0 }
0x19dd   :  { %v3334_v22 = vpop.f32.mrb[65].mxu0 }
0x19de   :  { %v2120_v48 = vpop.f32.mrb[66].mxu0 }
0x19df   :  { %v3335_v50 = vpop.f32.mrb[67].mxu0 }
0x19e0   :  { %v2165_v51 = vpop.f32.mrb[60].mxu1 }
0x19e1   :  { %v3446_v52 = vpack.i.bf16 %v2165_v51, %v2117_v21  ;;  %v3340_v54 = vpop.f32.mrb[61].mxu1 }
0x19e2   :  { %v2168_v55 = vpop.f32.mrb[62].mxu1 }
0x19e3   :  { %v3341_v56 = vpop.f32.mrb[63].mxu1 }
0x19e4   :  { %v2215_v58 = vpop.f32.mrb[68].mxu0 }
0x19e5   :  { %v2216_v59 = vadd.f32 %v4046_v23, %v2215_v58  ;;  %v3346_v60 = vpop.f32.mrb[69].mxu0 }
0x19e6   :  { %v2218_v62 = vpop.f32.mrb[70].mxu0 }
0x19e7   :  { %v3347_v63 = vpop.f32.mrb[71].mxu0  ;;  %v2271_v1 = vsel %vm201_vm2, %v2216_v59, -inf }
0x19e8   :  { %v2265_v4 = vpop.f32.mrb[64].mxu1  ;;  %2272 = vmax.xlane.f32.xlu1 %v2271_v1 }
0x19e9   :  { %v2266_v5 = vadd.f32 %v4052_v27, %v2265_v4  ;;  %v3352_v6 = vpop.f32.mrb[65].mxu1 }
0x19ea   :  { %v2268_v7 = vpop.f32.mrb[66].mxu1 }
0x19eb   :  { %v3353_v8 = vpop.f32.mrb[67].mxu1  ;;  %v2274_v9 = vsel %vm201_vm2, %v2266_v5, -inf }
0x19ec   :  { %2275 = vmax.xlane.f32.xlu0 %v2274_v9 }
0x19f9   :  { %2295 = vrot.lane.b32.xlu1 %v4023_v10, %s4362_s3 }
0x19fd   :  { %3442 = vrot.lane.b32.xlu1 %v3441_v39, %s4363_s22 }
0x1a01   :  { %3447 = vrot.lane.b32.xlu1 %v3446_v52, %s4364_s23 }
0x1a75   :  { %v2273_v23 = vpop.xlane.xlu1 %2272 }
0x1a76   :  { %v2277_v11 = vsub.f32 %v2216_v59, %v2273_v23 }
0x1a78   :  { %v2279_v12 = vmul.f32 1.442695, %v2277_v11 }
0x1a79   :  { %v2276_v27 = vpop.xlane.xlu0 %2275  ;;  %v2296_v15 = vpop.permute.xlu1 %2295 }
0x1a7a   :  { %3552 = vpow2.f32 %v2279_v12  ;;  %v2278_v16 = vsub.f32 %v2266_v5, %v2276_v27  ;;  %v2301_v18 = vsel %vm326_vm3, %v2296_v15, 0 }
0x1a7b   :  { %3355 = vmatpush3.bf16.msra.mxu0 %v2301_v18 }
0x1a7c   :  { %v2281_v19 = vmul.f32 1.442695, %v2278_v16  ;;  %3366 = vmatprep.subr.bf16.mxu0 %v3580_v14 }
0x1a7d   :  { %v3443_v42 = vpop.permute.xlu1 %3442 }
0x1a7e   :  { %3554 = vpow2.f32 %v2281_v19  ;;  %v3445_v32 = vunpack.i.h.bf16 %v3443_v42  ;;  %v3444_v46 = vunpack.i.l.bf16 %v3443_v42 }
0x1a80   :  { %v2416_v48 = vsel %vm201_vm2, %v4093_v0, %v3445_v32  ;;  %v2415_v50 = vsel %vm201_vm2, %v4091_v61, %v3444_v46  ;;  %v2988_v61 = vld [vmem:[%s4315_s7 + $0x1] ss:$0 sm:$0xff] }
0x1a81   :  { %v3448_v31 = vpop.permute.xlu1 %3447 }
0x1a82   :  { %v3450_v17 = vunpack.i.h.bf16 %v3448_v31  ;;  %v3449_v21 = vunpack.i.l.bf16 %v3448_v31 }
0x1a84   :  { %v3553_v10 = vpop.eup %3552  ;;  %v2417_v54 = vsel %vm1104_vm4, %v2415_v50, %v3449_v21  ;;  %v2418_v55 = vsel %vm1104_vm4, %v2416_v48, %v3450_v17 }
0x1a85   :  { %v2283_v53 = vsel %vm201_vm2, %v3553_v10, 0.0 }
0x1a86   :  { %2284 = vadd.xlane.f32.xlu0 %v2283_v53 }
0x1a88   :  { %v3555_v57 = vpop.eup %3554 }
0x1a89   :  { %v2286_v39 = vsel %vm201_vm2, %v3555_v57, 0.0 }
0x1a8a   :  { %2287 = vadd.xlane.f32.xlu0 %v2286_v39 }
0x1aa0   :  { %2343 = vrot.lane.b32.xlu0 %v4025_v13, %s4362_s3 }
0x1b13   :  { %v2285_v20 = vpop.xlane.xlu0 %2284 }
0x1b14   :  { %3556 = vrcp.f32 %v2285_v20 }
0x1b17   :  { %v2288_v24 = vpop.xlane.xlu0 %2287 }
0x1b18   :  { %3558 = vrcp.f32 %v2288_v24 }
0x1b1b   :  { %v2344_v26 = vpop.permute.xlu0 %2343 }
0x1b1c   :  { %v2349_v29 = vsel %vm326_vm3, %v2344_v26, 0 }
0x1b1d   :  { %3361 = vmatpush3.bf16.msra.mxu1 %v2349_v29 }
0x1b1e   :  { %v3557_v25 = vpop.eup %3556  ;;  %3374 = vmatprep.subr.bf16.mxu1 %v3580_v14 }
0x1b1f   :  { %v2291_v28 = vmul.f32 %v3557_v25, %v3553_v10  ;;  %v3471_v10 = vld [vmem:[%s4316_s10 + $0x18] sm:$0xff]  }
0x1b21   :  { %v2293_v30 = vpack.c.bf16 %v2291_v28, %v2291_v28  ;;  %v2994_v28 = vld [vmem:[%s4317_s8 + $0x1] ss:$0 sm:$0xff] }
0x1b22   :  { %v3559_v33 = vpop.eup %3558 }
0x1b23   :  { %v2292_v34 = vmul.f32 %v3559_v33, %v3555_v57  ;;  %3357 = vmatmul.mubr.msk.bf16.vlgmr.msra.gmra.mrb[72].mxu0 %vm201_vm2, %v2293_v30 }
0x1b24   :  { %3370 = vmatprep.mubr.msk.bf16.mxu0 %vm3581_vm1, %v3580_v14  ;;  %3367 = vmatpush3.bf16.msra.mxu0 %v3468_v35 }
0x1b25   :  { %v2294_v13 = vpack.c.bf16 %v2292_v34, %v2292_v34  ;;  %3368 = vmatprep.subr.bf16.mxu0 %v3580_v14 }
0x1b27   :  { %3363 = vmatmul.mubr.msk.bf16.vlgmr.msra.gmra.mrb[68].mxu1 %vm201_vm2, %v2294_v13  ;;  %v2995_v13 = vld [vmem:[%s4318_s9 + $0x1] ss:$0 sm:$0xff] }
0x1b28   :  { %3378 = vmatprep.mubr.msk.bf16.mxu1 %vm3581_vm1, %v3580_v14  ;;  %3369 = vmatpush3.bf16.msra.mxu0 %v3469_v36 }
0x1b29   :  { %3382 = vmatprep.subr.bf16.mxu0 %v3580_v14 }
0x1bf6   :  { %v2337_v37 = vpop.f32.mrb[72].mxu0 }
0x1bf7   :  { %v3358_v38 = vpop.f32.mrb[73].mxu0 }
0x1bf8   :  { %v2340_v47 = vpop.f32.mrb[74].mxu0 }
0x1bf9   :  { %v3359_v49 = vpop.f32.mrb[75].mxu0  ;;  %v3472_v47 = vld [vmem:[%s4319_s12 + $0x20] sm:$0xff]  }
0x1bfa   :  { %v2385_v40 = vpop.f32.mrb[68].mxu1  ;;  %v3473_v49 = vld [vmem:[%s4319_s12 + $0x28] sm:$0xff]  }
0x1bfb   :  { %v3451_v41 = vpack.i.bf16 %v2385_v40, %v2337_v37  ;;  %v3364_v43 = vpop.f32.mrb[69].mxu1  ;;  %v3474_v40 = vld [vmem:[%s4319_s12 + $0x30] sm:$0xff]  }
0x1bfc   :  { %v2388_v44 = vpop.f32.mrb[70].mxu1  ;;  %v3001_v43 = vld [vmem:[%s4320_s11 + $0x1] ss:$0 sm:$0xff] }
0x1bfd   :  { %v3365_v45 = vpop.f32.mrb[71].mxu1  ;;  %3452 = vrot.lane.b32.xlu1 %v3451_v41, %s4365_s24  ;;  %v3475_v41 = vld [vmem:[%s4319_s12 + $0x38] sm:$0xff]  }
0x1c6f   :  { %v3453_v22 = vpop.permute.xlu1 %3452 }
0x1c70   :  { %v3455_v51 = vunpack.i.h.bf16 %v3453_v22  ;;  %v3454_v52 = vunpack.i.l.bf16 %v3453_v22 }
0x1c72   :  { %v2420_v56 = vsel %vm1107_vm5, %v2418_v55, %v3455_v51  ;;  %v2419_v58 = vsel %vm1107_vm5, %v2417_v54, %v3454_v52 }
0x1c73   :  { %v2421_v59 = vpack.c.bf16 %v2420_v56, %v2419_v58 }
0x1c75   :  { %3371 = vmatmul.mubr.msk.bf16.vlgmr.msra.gmra.mrb[76].mxu0 %vm70_vm0, %v2421_v59 }
0x1c76   :  { %3390 = vmatprep.mubr.msk.bf16.mxu0 %vm3581_vm1, %v3580_v14  ;;  %3383 = vmatpush3.bf16.msra.mxu0 %v3472_v47  ;;  %v3023_v47 = vld [vmem:[%s4323_s15 + $0x1] ss:$0 sm:$0xff] }
0x1c77   :  { %3384 = vmatprep.subr.bf16.mxu0 %v3580_v14 }
0x1c7a   :  { %3385 = vmatpush3.bf16.msra.mxu0 %v3473_v49 }
0x1c7b   :  { %3386 = vmatprep.subr.bf16.mxu0 %v3580_v14 }
0x1c7e   :  { %3387 = vmatpush3.bf16.msra.mxu0 %v3474_v40 }
0x1c7f   :  { %3388 = vmatprep.subr.bf16.mxu0 %v3580_v14 }
0x1c82   :  { %3389 = vmatpush3.bf16.msra.mxu0 %v3475_v41 }
0x1d48   :  { %v2484_v0 = vpop.f32.mrb[76].mxu0 }
0x1d49   :  { %v2485_v60 = vadd.f32 %v2988_v61, %v2484_v0  ;;  %v3372_v62 = vpop.f32.mrb[77].mxu0 }
0x1d4a   :  { %v2487_v63 = vpop.f32.mrb[78].mxu0 }
0x1d4b   :  { %v2488_v1 = vadd.f32 %v2988_v61, %v2487_v63  ;;  %v3373_v4 = vpop.f32.mrb[79].mxu0  ;;  %v2491_v5 = vadd.f32 %v2485_v60, %v4011_v2 }
0x1d4d   :  { %v2497_v6 = vsel %vm70_vm0, %v2491_v5, 0.0  ;;  %v2492_v7 = vadd.f32 %v2488_v1, %v4013_v3  ;;  %v3470_v3 = vld [vmem:[%s4316_s10 + $0x10] sm:$0xff]  }
0x1d4e   :  { %2498 = vadd.xlane.f32.xlu0 %v2497_v6  ;;  %3375 = vmatpush3.bf16.msra.mxu1 %v3470_v3 }
0x1d4f   :  { %v2500_v8 = vsel %vm70_vm0, %v2492_v7, 0.0  ;;  %3376 = vmatprep.subr.bf16.mxu1 %v3580_v14 }
0x1d50   :  { %2501 = vadd.xlane.f32.xlu1 %v2500_v8 }
0x1d52   :  { %3377 = vmatpush3.bf16.msra.mxu1 %v3471_v10 }
0x1d53   :  { %3394 = vmatprep.subr.bf16.mxu1 %v3580_v14 }
0x1ddb   :  { %v2499_v9 = vpop.xlane.xlu0 %2498 }
0x1ddc   :  { %v2503_v23 = vmul.f32 0.03125, %v2499_v9 }
0x1ddd   :  { %v2502_v11 = vpop.xlane.xlu1 %2501 }
0x1dde   :  { %v2505_v12 = vsub.f32 %v2491_v5, %v2503_v23  ;;  %v2504_v27 = vmul.f32 0.03125, %v2502_v11  ;;  %v3014_v5 = vld [vmem:[%s4321_s13 + $0x1] ss:$0 sm:$0xff] }
0x1de0   :  { %v2506_v15 = vsub.f32 %v2492_v7, %v2504_v27  ;;  %v2507_v16 = vmul.f32 %v2505_v12, %v2505_v12 }
0x1de2   :  { %v2509_v18 = vsel %vm70_vm0, %v2507_v16, 0.0  ;;  %v2508_v19 = vmul.f32 %v2506_v15, %v2506_v15 }
0x1de3   :  { %2510 = vadd.xlane.f32.xlu0 %v2509_v18 }
0x1de4   :  { %v2512_v2 = vsel %vm70_vm0, %v2508_v19, 0.0 }
0x1de7   :  { %2513 = vadd.xlane.f32.xlu0 %v2512_v2 }
0x1e70   :  { %v2511_v53 = vpop.xlane.xlu0 %2510 }
0x1e71   :  { %v2515_v57 = vmul.f32 0.03125, %v2511_v53 }
0x1e73   :  { %v2517_v39 = vadd.f32 1e-12, %v2515_v57 }
0x1e74   :  { %v2514_v20 = vpop.xlane.xlu0 %2513 }
0x1e75   :  { %3560 = vrsqrt.f32 %v2517_v39  ;;  %v2516_v24 = vmul.f32 0.03125, %v2514_v20 }
0x1e77   :  { %v2518_v26 = vadd.f32 1e-12, %v2516_v24 }
0x1e79   :  { %3562 = vrsqrt.f32 %v2518_v26  ;;  %v3476_v26 = vld [vmem:[%s4324_s16] sm:$0xff]  }
0x1e7f   :  { %v3561_v29 = vpop.eup %3560 }
0x1e80   :  { %v2521_v25 = vmul.f32 %v3561_v29, %v2505_v12  ;;  %v3477_v29 = vld [vmem:[%s4324_s16 + $0x8] sm:$0xff]  }
0x1e82   :  { %v2529_v33 = vmul.f32 %v2994_v28, %v2521_v25 }
0x1e83   :  { %v3563_v30 = vpop.eup %3562 }
0x1e84   :  { %v2522_v34 = vmul.f32 %v3563_v30, %v2506_v15  ;;  %v2537_v36 = vadd.f32 %v2995_v13, %v2529_v33 }
0x1e86   :  { %v2530_v35 = vmul.f32 %v2994_v28, %v2522_v34 }
0x1e88   :  { %v2538_v37 = vadd.f32 %v2995_v13, %v2530_v35 }
0x1e8a   :  { %v2539_v38 = vpack.c.bf16 %v2538_v37, %v2537_v36 }
0x1e8c   :  { %3379 = vmatmul.mubr.msk.bf16.vlgmr.msra.gmra.mrb[72].mxu1 %vm70_vm0, %v2539_v38 }
0x1e8d   :  { %3398 = vmatprep.mubr.msk.bf16.mxu1 %vm3581_vm1, %v3580_v14  ;;  %3395 = vmatpush3.bf16.msra.mxu1 %v3476_v26 }
0x1e8e   :  { %3396 = vmatprep.subr.bf16.mxu1 %v3580_v14 }
0x1e91   :  { %3397 = vmatpush3.bf16.msra.mxu1 %v3477_v29 }
0x1e92   :  { %3402 = vmatprep.subr.bf16.mxu1 %v3580_v14 }
0x1f5f   :  { %v2602_v44 = vpop.f32.mrb[72].mxu1 }
0x1f60   :  { %v2603_v45 = vadd.f32 %v3001_v43, %v2602_v44  ;;  %v3380_v42 = vpop.f32.mrb[73].mxu1 }
0x1f61   :  { %v2605_v31 = vpop.f32.mrb[74].mxu1 }
0x1f62   :  { %v2611_v32 = vmul.f32 0.044715, %v2603_v45  ;;  %v2606_v46 = vadd.f32 %v3001_v43, %v2605_v31  ;;  %v3381_v17 = vpop.f32.mrb[75].mxu1  ;;  %v2609_v0 = vmul.f32 0.5, %v2603_v45 }
0x1f64   :  { %v2613_v21 = vmul.f32 %v2611_v32, %v2603_v45  ;;  %v2612_v22 = vmul.f32 0.044715, %v2606_v46  ;;  %v2610_v60 = vmul.f32 0.5, %v2606_v46 }
0x1f66   :  { %v2615_v48 = vmul.f32 %v2613_v21, %v2603_v45  ;;  %v2614_v50 = vmul.f32 %v2612_v22, %v2606_v46  ;;  %v3478_v22 = vld [vmem:[%s4325_s18] sm:$0xff]  }
0x1f68   :  { %v2617_v51 = vadd.f32 %v2615_v48, %v2603_v45  ;;  %v2616_v52 = vmul.f32 %v2614_v50, %v2606_v46  ;;  %v3479_v48 = vld [vmem:[%s4325_s18 + $0x8] sm:$0xff]   ;;  %v3024_v50 = vld [vmem:[%s4326_s17] ss:$0 sm:$0xff] }
0x1f6a   :  { %v2619_v54 = vmul.f32 0.7978846, %v2617_v51  ;;  %v2618_v55 = vadd.f32 %v2616_v52, %v2606_v46 }
0x1f6c   :  { %3564 = vtanh.f32 %v2619_v54  ;;  %v2620_v56 = vmul.f32 0.7978846, %v2618_v55 }
0x1f6e   :  { %3566 = vtanh.f32 %v2620_v56 }
0x1f76   :  { %v3565_v58 = vpop.eup %3564 }
0x1f77   :  { %v2623_v59 = vadd.f32 1.0, %v3565_v58 }
0x1f78   :  { %v3567_v61 = vpop.eup %3566 }
0x1f79   :  { %v2624_v62 = vadd.f32 1.0, %v3567_v61  ;;  %v2625_v63 = vmul.f32 %v2623_v59, %v2609_v0 }
0x1f7b   :  { %v2626_v1 = vmul.f32 %v2624_v62, %v2610_v60 }
0x1f7d   :  { %v2627_v4 = vpack.c.bf16 %v2626_v1, %v2625_v63 }
0x1f7f   :  { %3391 = vmatmul.mubr.msk.bf16.vlgmr.msra.gmra.mrb[80].mxu0 %vm1350_vm6, %v2627_v4 }
0x2052   :  { %v2706_v6 = vpop.f32.mrb[80].mxu0 }
0x2053   :  { %v2707_v7 = vadd.f32 %v3014_v5, %v2706_v6  ;;  %v3392_v8 = vpop.f32.mrb[81].mxu0 }
0x2054   :  { %v2709_v9 = vpop.f32.mrb[82].mxu0 }
0x2055   :  { %v2713_v23 = vadd.f32 %v2707_v7, %v2537_v36  ;;  %v2710_v11 = vadd.f32 %v3014_v5, %v2709_v9  ;;  %v3393_v12 = vpop.f32.mrb[83].mxu0  ;;  %v3022_v36 = vld [vmem:[%s4322_s14 + $0x1] ss:$0 sm:$0xff] }
0x2057   :  { %v2714_v27 = vadd.f32 %v2710_v11, %v2538_v37  ;;  %v2719_v15 = vsel %vm70_vm0, %v2713_v23, 0.0 }
0x2058   :  { %2720 = vadd.xlane.f32.xlu1 %v2719_v15 }
0x2059   :  { %v2722_v16 = vsel %vm70_vm0, %v2714_v27, 0.0 }
0x205a   :  { %2723 = vadd.xlane.f32.xlu0 %v2722_v16 }
0x20e5   :  { %v2721_v18 = vpop.xlane.xlu1 %2720 }
0x20e6   :  { %v2725_v19 = vmul.f32 0.03125, %v2721_v18 }
0x20e7   :  { %v2724_v2 = vpop.xlane.xlu0 %2723 }
0x20e8   :  { %v2727_v3 = vsub.f32 %v2713_v23, %v2725_v19  ;;  %v2726_v10 = vmul.f32 0.03125, %v2724_v2 }
0x20ea   :  { %v2728_v53 = vsub.f32 %v2714_v27, %v2726_v10  ;;  %v2729_v57 = vmul.f32 %v2727_v3, %v2727_v3 }
0x20ec   :  { %v2731_v39 = vsel %vm70_vm0, %v2729_v57, 0.0  ;;  %v2730_v20 = vmul.f32 %v2728_v53, %v2728_v53 }
0x20ed   :  { %2732 = vadd.xlane.f32.xlu1 %v2731_v39 }
0x20ee   :  { %v2734_v24 = vsel %vm70_vm0, %v2730_v20, 0.0 }
0x20ef   :  { %2735 = vadd.xlane.f32.xlu0 %v2734_v24 }
0x217a   :  { %v2733_v25 = vpop.xlane.xlu1 %2732 }
0x217b   :  { %v2737_v28 = vmul.f32 0.03125, %v2733_v25 }
0x217c   :  { %v2736_v30 = vpop.xlane.xlu0 %2735 }
0x217d   :  { %v2739_v33 = vadd.f32 1e-12, %v2737_v28  ;;  %v2738_v34 = vmul.f32 0.03125, %v2736_v30 }
0x217f   :  { %3568 = vrsqrt.f32 %v2739_v33  ;;  %v2740_v13 = vadd.f32 1e-12, %v2738_v34 }
0x2181   :  { %3570 = vrsqrt.f32 %v2740_v13 }
0x2189   :  { %v3569_v35 = vpop.eup %3568 }
0x218a   :  { %v2743_v37 = vmul.f32 %v3569_v35, %v2727_v3 }
0x218b   :  { %v3571_v38 = vpop.eup %3570 }
0x218c   :  { %v2751_v49 = vmul.f32 %v3022_v36, %v2743_v37  ;;  %v2744_v40 = vmul.f32 %v3571_v38, %v2728_v53 }
0x218e   :  { %v2759_v41 = vadd.f32 %v3023_v47, %v2751_v49  ;;  %v2752_v43 = vmul.f32 %v3022_v36, %v2744_v40 }
0x2190   :  { %v2760_v44 = vadd.f32 %v3023_v47, %v2752_v43  ;;  %v2761_v45 = vpack.c.bf16 %v2759_v41, %v2759_v41 }
0x2192   :  { %v2762_v42 = vpack.c.bf16 %v2760_v44, %v2760_v44  ;;  %v2776_v32 = vunpack.c.l.b16 %v2761_v45 }
0x2194   :  { %v2777_v31 = vunpack.c.l.b16 %v2762_v42 }
0x2196   :  { %v2778_v46 = vrot.slane %v2777_v31, 7 }
0x2198   :  { %v2780_v17 = vsel %vm2779_vm7, %v2778_v46, %v2776_v32 }
0x2199   :  { %v2781_v21 = vpack.c.b16 %v2780_v17, %v2780_v17 }
0x219b   :  { %3399 = vmatmul.mubr.msk.bf16.vlgmr.msra.gmra.mrb[76].mxu1 %vm70_vm0, %v2781_v21 }
0x219c   :  { %3406 = vmatprep.mubr.msk.bf16.mxu1 %vm3581_vm1, %v3580_v14  ;;  %3403 = vmatpush3.bf16.msra.mxu1 %v3478_v22 }
0x219d   :  { %3404 = vmatprep.subr.bf16.mxu1 %v3580_v14  ;;  %v3028_v14 = vld [vmem:[%s4327_s19] ss:$0 sm:$0xff] }
0x21a0   :  { %3405 = vmatpush3.bf16.msra.mxu1 %v3479_v48 }
0x226e   :  { %v2831_v51 = vpop.f32.mrb[76].mxu1 }
0x226f   :  { %v2832_v52 = vadd.f32 %v3024_v50, %v2831_v51  ;;  %v3400_v54 = vpop.f32.mrb[77].mxu1 }
0x2270   :  { %v2834_v55 = vpop.f32.mrb[78].mxu1 }
0x2271   :  { %3572 = vtanh.f32 %v2832_v52  ;;  %v3401_v56 = vpop.f32.mrb[79].mxu1 }
0x227b   :  { %v3573_v58 = vpop.eup %3572 }
0x227c   :  { %v2838_v59 = vpack.c.bf16 %v3573_v58, %v3573_v58 }
0x227e   :  { %3407 = vmatmul.mubr.msk.bf16.vlgmr.msra.gmra.mrb[80].mxu1 %vm70_vm0, %v2838_v59 }
0x2351   :  { %v2899_v61 = vpop.f32.mrb[80].mxu1 }
0x2352   :  { %v2900_v0 = vadd.f32 %v3028_v14, %v2899_v61  ;;  %v3408_v60 = vpop.f32.mrb[81].mxu1 }
0x2353   :  { %v2902_v62 = vpop.f32.mrb[82].mxu1 }
0x2354   :  { %v2905_v63 = vsub.f32 0.0, %v2900_v0  ;;  %v3409_v1 = vpop.f32.mrb[83].mxu1 }
0x2356   :  { %v2906_v4 = vmul.f32 1.442695, %v2905_v63 }
0x2358   :  { %3574 = vpow2.f32 %v2906_v4 }
0x2362   :  { %v3575_v5 = vpop.eup %3574 }
0x2363   :  { %v2908_v6 = vadd.f32 1.0, %v3575_v5 }
0x2365   :  { %3576 = vrcp.f32 %v2908_v6 }
0x236f   :  { %v3577_v7 = vpop.eup %3576 }
0x2370   :  { %2911 = vst [vmem:[%s4328_s20] sm:$0x3] %v3577_v7 }

</bundles_post_ra>
